<compile_context>
chip_gen: v7x
topology: tpu7x:2x2x1
jax: 0.10.0
libtpu: 0.0.40
codegen_flags: <defaults>
</compile_context>

<pallas_src>
import jax
import jax.numpy as jnp
import numpy as np
from jax.experimental import pallas as pl
from jax.experimental.pallas import tpu as pltpu


# ----------------------------------------------------------------------------
# Fused Pallas kernel
# ----------------------------------------------------------------------------
def _make_fused_kernel(S, Bp, V, E, H, OPAD, num_layers):
    """Builds the fused forward kernel for static sizes S, Bp, V, E, H, OPAD.

    Gate columns of W_ih / W_hh / bias are assumed pre-reordered to [i, f, o, g]
    (sigmoid region first, tanh region last).
    """

    def kernel(*refs):
        onehot_ref, emb_ref = refs[0], refs[1]
        layer_refs = refs[2:2 + 3 * num_layers]
        wout_ref = refs[2 + 3 * num_layers]
        bout_ref = refs[3 + 3 * num_layers]
        out_ref = refs[4 + 3 * num_layers]
        hs_ref = refs[5 + 3 * num_layers]          # VMEM scratch (S*Bp, H) f32

        # ---- embedding lookup: one bf16 MXU matmul (one-hot built in wrapper) --
        x = jnp.dot(onehot_ref[...], emb_ref[...],
                    preferred_element_type=jnp.float32)            # (S*Bp, E) f32

        # Lane mask: lanes [0, 3H) -> sigmoid, lanes [3H, 4H) -> tanh.
        # Hoisted once (JAX does not CSE broadcast_in_dim inside unrolled loops).
        lane = jax.lax.broadcasted_iota(jnp.int32, (Bp, 4 * H), 1)
        sig_region = lane < 3 * H

        prev = x                                                    # (S*Bp, din)
        for layer in range(num_layers):
            wih_ref, whh_ref, b_ref = layer_refs[3 * layer:3 * layer + 3]

            # Hoisted input projection (+ folded bias) for the whole sequence.
            gates_in = (jnp.dot(prev.astype(jnp.bfloat16), wih_ref[...],
                                preferred_element_type=jnp.float32)
                        + b_ref[...])                               # (S*Bp, 4H) f32
            whh = whh_ref[...]                                      # (H, 4H) bf16

            h = jnp.zeros((Bp, H), jnp.float32)
            c = jnp.zeros((Bp, H), jnp.float32)
            # Static unroll of the recurrence (S is small); all slices static.
            for t in range(S):
                g = (gates_in[t * Bp:(t + 1) * Bp, :]
                     + jnp.dot(h.astype(jnp.bfloat16), whh,
                               preferred_element_type=jnp.float32))  # (Bp, 4H)
                # Full-vreg transcendentals + single lane-mask select.
                comb = jnp.where(sig_region, jax.nn.sigmoid(g), jnp.tanh(g))
                i_g = comb[:, 0 * H:1 * H]
                f_g = comb[:, 1 * H:2 * H]
                o_g = comb[:, 2 * H:3 * H]
                g_g = comb[:, 3 * H:4 * H]
                c = f_g * c + i_g * g_g
                h = o_g * jnp.tanh(c)
                hs_ref[pl.ds(t * Bp, Bp), :] = h                    # scratch store
            prev = hs_ref[...]                                      # (S*Bp, H) f32

        # Lane-dense (OPAD = 128-wide) output projection; sliced in the wrapper.
        out_ref[...] = (jnp.dot(prev.astype(jnp.bfloat16), wout_ref[...],
                                preferred_element_type=jnp.float32)
                        + bout_ref[...])

    return kernel


# ----------------------------------------------------------------------------
# Wrapper
# ----------------------------------------------------------------------------
def lstm_tagger_forward(sentence, params):
    """sentence: (seq_len, batch) int32 token ids.  Returns (seq, batch, output_dim)."""
    S, B = sentence.shape
    V, E = params["embedding"].shape
    H = params["lstm_layers"][0][1].shape[0]
    O = params["out_w_t"].shape[1]
    num_layers = len(params["lstm_layers"])

    Bp = max(8, ((B + 7) // 8) * 8)            # pad batch to a full sublane tile
    OPAD = max(128, ((O + 127) // 128) * 128)  # lane-dense output slab

    # One-hot built wrapper-side (trivial XLA), bf16 so the gather matmul is a
    # single-pass bf16 MXU op.
    ids = jnp.zeros((S, Bp), jnp.int32).at[:, :B].set(sentence.astype(jnp.int32))
    onehot = (ids.reshape(S * Bp, 1)
              == jnp.arange(V, dtype=jnp.int32)[None, :]).astype(jnp.bfloat16)

    # Reorder gate columns from PyTorch [i, f, g, o] to [i, f, o, g] so the
    # sigmoid region is contiguous (lanes [0, 3H)) and tanh is last.
    perm = np.concatenate([np.arange(0, H), np.arange(H, 2 * H),
                           np.arange(3 * H, 4 * H), np.arange(2 * H, 3 * H)])

    args = [onehot, params["embedding"].astype(jnp.bfloat16)]
    for (w_ih_t, w_hh_t, b) in params["lstm_layers"]:
        args += [w_ih_t[:, perm].astype(jnp.bfloat16),
                 w_hh_t[:, perm].astype(jnp.bfloat16),
                 b[:, perm].astype(jnp.float32)]
    wout = jnp.zeros((H, OPAD), jnp.float32).at[:, :O].set(params["out_w_t"])
    bout = jnp.zeros((1, OPAD), jnp.float32).at[:, :O].set(params["out_b"])
    args += [wout.astype(jnp.bfloat16), bout]

    kernel = _make_fused_kernel(S, Bp, V, E, H, OPAD, num_layers)
    out2d = pl.pallas_call(
        kernel,
        out_shape=jax.ShapeDtypeStruct((S * Bp, OPAD), jnp.float32),
        scratch_shapes=[pltpu.VMEM((S * Bp, H), jnp.float32)],
        compiler_params=pltpu.CompilerParams(vmem_limit_bytes=32 * 1024 * 1024),
    )(*args)

    return out2d.reshape(S, Bp, OPAD)[:, :B, :O]


# ----------------------------------------------------------------------------
# Pure-JAX reference (PyTorch gate order; same bf16-matmul / f32-state math)
# ----------------------------------------------------------------------------
def reference_forward(sentence, params):
    S, B = sentence.shape
    x = params["embedding"][sentence].astype(jnp.float32)          # (S, B, E)
    for (w_ih_t, w_hh_t, b) in params["lstm_layers"]:
        H = w_hh_t.shape[0]
        wih = w_ih_t.astype(jnp.bfloat16)
        whh = w_hh_t.astype(jnp.bfloat16)

        def step(carry, xt):
            h, c = carry
            gates = (jnp.dot(xt.astype(jnp.bfloat16), wih,
                             preferred_element_type=jnp.float32)
                     + jnp.dot(h.astype(jnp.bfloat16), whh,
                               preferred_element_type=jnp.float32)
                     + b[0])
            i = jax.nn.sigmoid(gates[:, 0 * H:1 * H])
            f = jax.nn.sigmoid(gates[:, 1 * H:2 * H])
            g = jnp.tanh(gates[:, 2 * H:3 * H])
            o = jax.nn.sigmoid(gates[:, 3 * H:4 * H])
            c = f * c + i * g
            h = o * jnp.tanh(c)
            return (h, c), h

        init = (jnp.zeros((B, H), jnp.float32), jnp.zeros((B, H), jnp.float32))
        _, hs = jax.lax.scan(step, init, x)
        x = hs
    out = (jnp.dot(x.reshape(S * B, -1).astype(jnp.bfloat16),
                   params["out_w_t"].astype(jnp.bfloat16),
                   preferred_element_type=jnp.float32)
           + params["out_b"][0])
    return out.reshape(S, B, -1)


# ----------------------------------------------------------------------------
# Main
# ----------------------------------------------------------------------------
if __name__ == "__main__":
    vocab_size = 20
    embedding_dim = 16
    hidden_dim = 32
    output_dim = 8
    num_hidden_layers = 2
    seq_len = 8
    batch = 2

    key = jax.random.PRNGKey(0)
    keys = jax.random.split(key, 4 + 3 * num_hidden_layers)

    k_stdv = 1.0 / np.sqrt(hidden_dim)
    params = {}
    params["embedding"] = jax.random.normal(
        keys[0], (vocab_size, embedding_dim), jnp.float32)

    lstm_layers = []
    for layer in range(num_hidden_layers):
        din = embedding_dim if layer == 0 else hidden_dim
        k_wih, k_whh, k_b = keys[1 + 3 * layer: 4 + 3 * layer]
        # PyTorch stores (4H, D) / (4H, H); pre-transpose for x @ W_T.
        w_ih_t = jax.random.uniform(k_wih, (din, 4 * hidden_dim),
                                    jnp.float32, -k_stdv, k_stdv)
        w_hh_t = jax.random.uniform(k_whh, (hidden_dim, 4 * hidden_dim),
                                    jnp.float32, -k_stdv, k_stdv)
        # b_ih + b_hh folded into a single bias (equivalent in the forward pass).
        bias = jax.random.uniform(k_b, (1, 4 * hidden_dim),
                                  jnp.float32, -2 * k_stdv, 2 * k_stdv)
        lstm_layers.append((w_ih_t, w_hh_t, bias))
    params["lstm_layers"] = lstm_layers

    k_ow, k_ob, k_sent = keys[-3:]
    params["out_w_t"] = jax.random.uniform(
        k_ow, (hidden_dim, output_dim), jnp.float32, -k_stdv, k_stdv)
    params["out_b"] = jax.random.uniform(
        k_ob, (1, output_dim), jnp.float32, -k_stdv, k_stdv)

    sentence = jax.random.randint(
        k_sent, (seq_len, batch), 0, vocab_size, jnp.int32)

    fwd = jax.jit(lstm_tagger_forward)
    out = fwd(sentence, params)
    out = jax.block_until_ready(out)

    ref = reference_forward(sentence, params)
    assert out.shape == (seq_len, batch, output_dim)
    np.testing.assert_allclose(np.asarray(out), np.asarray(ref),
                               rtol=1e-2, atol=1e-2)

    print("KERNEL_OK")
</pallas_src>

<mosaic_0001>
module attributes {stable_mosaic.version = 11 : i64} {
  func.func @kernel(%arg0: memref<64x20xbf16, #tpu.memory_space<vmem>>, %arg1: memref<20x16xbf16, #tpu.memory_space<vmem>>, %arg2: memref<16x128xbf16, #tpu.memory_space<vmem>>, %arg3: memref<32x128xbf16, #tpu.memory_space<vmem>>, %arg4: memref<1x128xf32, #tpu.memory_space<vmem>>, %arg5: memref<32x128xbf16, #tpu.memory_space<vmem>>, %arg6: memref<32x128xbf16, #tpu.memory_space<vmem>>, %arg7: memref<1x128xf32, #tpu.memory_space<vmem>>, %arg8: memref<32x128xbf16, #tpu.memory_space<vmem>>, %arg9: memref<1x128xf32, #tpu.memory_space<vmem>>, %arg10: memref<64x128xf32, #tpu.memory_space<vmem>>, %arg11: memref<64x32xf32, #tpu.memory_space<vmem>>) attributes {dimension_semantics = [], scalar_prefetch = 0 : i64, scratch_operands = 1 : i64, tpu.core_type = #tpu.core_type<tc>} {
    %c0 = arith.constant 0 : index
    %c0_0 = arith.constant 0 : index
    %0 = vector.load %arg0[%c0, %c0_0] : memref<64x20xbf16, #tpu.memory_space<vmem>>, vector<64x20xbf16>
    %c0_1 = arith.constant 0 : index
    %c0_2 = arith.constant 0 : index
    %1 = vector.load %arg1[%c0_1, %c0_2] : memref<20x16xbf16, #tpu.memory_space<vmem>>, vector<20x16xbf16>
    %cst = arith.constant dense<0.000000e+00> : vector<64x16xf32>
    %2 = tpu.matmul %0, %1, %cst {dimension_numbers = #tpu.dot_dimension_numbers<[1], [0], [0], [1], [0, 0, 1, 1], [], []>} : vector<64x20xbf16>, vector<20x16xbf16>, vector<64x16xf32> -> vector<64x16xf32>
    %3 = tpu.iota {dimensions = array<i32: 1>} : vector<8x128xi32>
    %c96_i32 = arith.constant 96 : i32
    %4 = vector.broadcast %c96_i32 : i32 to vector<8x128xi32>
    %5 = arith.cmpi slt, %3, %4 : vector<8x128xi32>
    %6 = arith.truncf %2 : vector<64x16xf32> to vector<64x16xbf16>
    %c0_3 = arith.constant 0 : index
    %c0_4 = arith.constant 0 : index
    %7 = vector.load %arg2[%c0_3, %c0_4] : memref<16x128xbf16, #tpu.memory_space<vmem>>, vector<16x128xbf16>
    %cst_5 = arith.constant dense<0.000000e+00> : vector<64x128xf32>
    %8 = tpu.matmul %6, %7, %cst_5 {dimension_numbers = #tpu.dot_dimension_numbers<[1], [0], [0], [1], [0, 0, 1, 1], [], []>} : vector<64x16xbf16>, vector<16x128xbf16>, vector<64x128xf32> -> vector<64x128xf32>
    %c0_6 = arith.constant 0 : index
    %c0_7 = arith.constant 0 : index
    %9 = vector.load %arg4[%c0_6, %c0_7] : memref<1x128xf32, #tpu.memory_space<vmem>>, vector<1x128xf32>
    %10 = vector.broadcast %9 : vector<1x128xf32> to vector<64x128xf32>
    %11 = arith.addf %8, %10 : vector<64x128xf32>
    %c0_8 = arith.constant 0 : index
    %c0_9 = arith.constant 0 : index
    %12 = vector.load %arg3[%c0_8, %c0_9] : memref<32x128xbf16, #tpu.memory_space<vmem>>, vector<32x128xbf16>
    %cst_10 = arith.constant 0.000000e+00 : f32
    %13 = vector.broadcast %cst_10 : f32 to vector<8x32xf32>
    %cst_11 = arith.constant 0.000000e+00 : f32
    %14 = vector.broadcast %cst_11 : f32 to vector<8x32xf32>
    %15 = vector.extract_strided_slice %11 {offsets = [0, 0], sizes = [8, 128], strides = [1, 1]} : vector<64x128xf32> to vector<8x128xf32>
    %16 = arith.truncf %13 : vector<8x32xf32> to vector<8x32xbf16>
    %cst_12 = arith.constant dense<0.000000e+00> : vector<8x128xf32>
    %17 = tpu.matmul %16, %12, %cst_12 {dimension_numbers = #tpu.dot_dimension_numbers<[1], [0], [0], [1], [0, 0, 1, 1], [], []>} : vector<8x32xbf16>, vector<32x128xbf16>, vector<8x128xf32> -> vector<8x128xf32>
    %18 = arith.addf %15, %17 : vector<8x128xf32>
    %19 = arith.negf %18 : vector<8x128xf32>
    %20 = math.exp %19 : vector<8x128xf32>
    %cst_13 = arith.constant 1.000000e+00 : f32
    %21 = vector.broadcast %cst_13 : f32 to vector<8x128xf32>
    %22 = arith.addf %21, %20 : vector<8x128xf32>
    %23 = arith.divf %21, %22 : vector<8x128xf32>
    %24 = math.tanh %18 : vector<8x128xf32>
    %25 = arith.select %5, %23, %24 : vector<8x128xi1>, vector<8x128xf32>
    %26 = vector.extract_strided_slice %25 {offsets = [0, 0], sizes = [8, 32], strides = [1, 1]} : vector<8x128xf32> to vector<8x32xf32>
    %27 = vector.extract_strided_slice %25 {offsets = [0, 32], sizes = [8, 32], strides = [1, 1]} : vector<8x128xf32> to vector<8x32xf32>
    %28 = vector.extract_strided_slice %25 {offsets = [0, 64], sizes = [8, 32], strides = [1, 1]} : vector<8x128xf32> to vector<8x32xf32>
    %29 = vector.extract_strided_slice %25 {offsets = [0, 96], sizes = [8, 32], strides = [1, 1]} : vector<8x128xf32> to vector<8x32xf32>
    %30 = arith.mulf %27, %14 : vector<8x32xf32>
    %31 = arith.mulf %26, %29 : vector<8x32xf32>
    %32 = arith.addf %30, %31 : vector<8x32xf32>
    %33 = math.tanh %32 : vector<8x32xf32>
    %34 = arith.mulf %28, %33 : vector<8x32xf32>
    %c0_14 = arith.constant 0 : index
    %c0_15 = arith.constant 0 : index
    %35 = vector.load %arg11[%c0_14, %c0_15] : memref<64x32xf32, #tpu.memory_space<vmem>>, vector<8x32xf32>
    tpu.vector_store %arg11[%c0_14, %c0_15], %34 {strides = array<i32>} : memref<64x32xf32, #tpu.memory_space<vmem>>, vector<8x32xf32>,
    %36 = vector.extract_strided_slice %11 {offsets = [8, 0], sizes = [8, 128], strides = [1, 1]} : vector<64x128xf32> to vector<8x128xf32>
    %37 = arith.truncf %34 : vector<8x32xf32> to vector<8x32xbf16>
    %cst_16 = arith.constant dense<0.000000e+00> : vector<8x128xf32>
    %38 = tpu.matmul %37, %12, %cst_16 {dimension_numbers = #tpu.dot_dimension_numbers<[1], [0], [0], [1], [0, 0, 1, 1], [], []>} : vector<8x32xbf16>, vector<32x128xbf16>, vector<8x128xf32> -> vector<8x128xf32>
    %39 = arith.addf %36, %38 : vector<8x128xf32>
    %40 = arith.negf %39 : vector<8x128xf32>
    %41 = math.exp %40 : vector<8x128xf32>
    %cst_17 = arith.constant 1.000000e+00 : f32
    %42 = vector.broadcast %cst_17 : f32 to vector<8x128xf32>
    %43 = arith.addf %42, %41 : vector<8x128xf32>
    %44 = arith.divf %42, %43 : vector<8x128xf32>
    %45 = math.tanh %39 : vector<8x128xf32>
    %46 = arith.select %5, %44, %45 : vector<8x128xi1>, vector<8x128xf32>
    %47 = vector.extract_strided_slice %46 {offsets = [0, 0], sizes = [8, 32], strides = [1, 1]} : vector<8x128xf32> to vector<8x32xf32>
    %48 = vector.extract_strided_slice %46 {offsets = [0, 32], sizes = [8, 32], strides = [1, 1]} : vector<8x128xf32> to vector<8x32xf32>
    %49 = vector.extract_strided_slice %46 {offsets = [0, 64], sizes = [8, 32], strides = [1, 1]} : vector<8x128xf32> to vector<8x32xf32>
    %50 = vector.extract_strided_slice %46 {offsets = [0, 96], sizes = [8, 32], strides = [1, 1]} : vector<8x128xf32> to vector<8x32xf32>
    %51 = arith.mulf %48, %32 : vector<8x32xf32>
    %52 = arith.mulf %47, %50 : vector<8x32xf32>
    %53 = arith.addf %51, %52 : vector<8x32xf32>
    %54 = math.tanh %53 : vector<8x32xf32>
    %55 = arith.mulf %49, %54 : vector<8x32xf32>
    %c8 = arith.constant 8 : index
    %c0_18 = arith.constant 0 : index
    %56 = vector.load %arg11[%c8, %c0_18] : memref<64x32xf32, #tpu.memory_space<vmem>>, vector<8x32xf32>
    tpu.vector_store %arg11[%c8, %c0_18], %55 {strides = array<i32>} : memref<64x32xf32, #tpu.memory_space<vmem>>, vector<8x32xf32>,
    %57 = vector.extract_strided_slice %11 {offsets = [16, 0], sizes = [8, 128], strides = [1, 1]} : vector<64x128xf32> to vector<8x128xf32>
    %58 = arith.truncf %55 : vector<8x32xf32> to vector<8x32xbf16>
    %cst_19 = arith.constant dense<0.000000e+00> : vector<8x128xf32>
    %59 = tpu.matmul %58, %12, %cst_19 {dimension_numbers = #tpu.dot_dimension_numbers<[1], [0], [0], [1], [0, 0, 1, 1], [], []>} : vector<8x32xbf16>, vector<32x128xbf16>, vector<8x128xf32> -> vector<8x128xf32>
    %60 = arith.addf %57, %59 : vector<8x128xf32>
    %61 = arith.negf %60 : vector<8x128xf32>
    %62 = math.exp %61 : vector<8x128xf32>
    %cst_20 = arith.constant 1.000000e+00 : f32
    %63 = vector.broadcast %cst_20 : f32 to vector<8x128xf32>
    %64 = arith.addf %63, %62 : vector<8x128xf32>
    %65 = arith.divf %63, %64 : vector<8x128xf32>
    %66 = math.tanh %60 : vector<8x128xf32>
    %67 = arith.select %5, %65, %66 : vector<8x128xi1>, vector<8x128xf32>
    %68 = vector.extract_strided_slice %67 {offsets = [0, 0], sizes = [8, 32], strides = [1, 1]} : vector<8x128xf32> to vector<8x32xf32>
    %69 = vector.extract_strided_slice %67 {offsets = [0, 32], sizes = [8, 32], strides = [1, 1]} : vector<8x128xf32> to vector<8x32xf32>
    %70 = vector.extract_strided_slice %67 {offsets = [0, 64], sizes = [8, 32], strides = [1, 1]} : vector<8x128xf32> to vector<8x32xf32>
    %71 = vector.extract_strided_slice %67 {offsets = [0, 96], sizes = [8, 32], strides = [1, 1]} : vector<8x128xf32> to vector<8x32xf32>
    %72 = arith.mulf %69, %53 : vector<8x32xf32>
    %73 = arith.mulf %68, %71 : vector<8x32xf32>
    %74 = arith.addf %72, %73 : vector<8x32xf32>
    %75 = math.tanh %74 : vector<8x32xf32>
    %76 = arith.mulf %70, %75 : vector<8x32xf32>
    %c16 = arith.constant 16 : index
    %c0_21 = arith.constant 0 : index
    %77 = vector.load %arg11[%c16, %c0_21] : memref<64x32xf32, #tpu.memory_space<vmem>>, vector<8x32xf32>
    tpu.vector_store %arg11[%c16, %c0_21], %76 {strides = array<i32>} : memref<64x32xf32, #tpu.memory_space<vmem>>, vector<8x32xf32>,
    %78 = vector.extract_strided_slice %11 {offsets = [24, 0], sizes = [8, 128], strides = [1, 1]} : vector<64x128xf32> to vector<8x128xf32>
    %79 = arith.truncf %76 : vector<8x32xf32> to vector<8x32xbf16>
    %cst_22 = arith.constant dense<0.000000e+00> : vector<8x128xf32>
    %80 = tpu.matmul %79, %12, %cst_22 {dimension_numbers = #tpu.dot_dimension_numbers<[1], [0], [0], [1], [0, 0, 1, 1], [], []>} : vector<8x32xbf16>, vector<32x128xbf16>, vector<8x128xf32> -> vector<8x128xf32>
    %81 = arith.addf %78, %80 : vector<8x128xf32>
    %82 = arith.negf %81 : vector<8x128xf32>
    %83 = math.exp %82 : vector<8x128xf32>
    %cst_23 = arith.constant 1.000000e+00 : f32
    %84 = vector.broadcast %cst_23 : f32 to vector<8x128xf32>
    %85 = arith.addf %84, %83 : vector<8x128xf32>
    %86 = arith.divf %84, %85 : vector<8x128xf32>
    %87 = math.tanh %81 : vector<8x128xf32>
    %88 = arith.select %5, %86, %87 : vector<8x128xi1>, vector<8x128xf32>
    %89 = vector.extract_strided_slice %88 {offsets = [0, 0], sizes = [8, 32], strides = [1, 1]} : vector<8x128xf32> to vector<8x32xf32>
    %90 = vector.extract_strided_slice %88 {offsets = [0, 32], sizes = [8, 32], strides = [1, 1]} : vector<8x128xf32> to vector<8x32xf32>
    %91 = vector.extract_strided_slice %88 {offsets = [0, 64], sizes = [8, 32], strides = [1, 1]} : vector<8x128xf32> to vector<8x32xf32>
    %92 = vector.extract_strided_slice %88 {offsets = [0, 96], sizes = [8, 32], strides = [1, 1]} : vector<8x128xf32> to vector<8x32xf32>
    %93 = arith.mulf %90, %74 : vector<8x32xf32>
    %94 = arith.mulf %89, %92 : vector<8x32xf32>
    %95 = arith.addf %93, %94 : vector<8x32xf32>
    %96 = math.tanh %95 : vector<8x32xf32>
    %97 = arith.mulf %91, %96 : vector<8x32xf32>
    %c24 = arith.constant 24 : index
    %c0_24 = arith.constant 0 : index
    %98 = vector.load %arg11[%c24, %c0_24] : memref<64x32xf32, #tpu.memory_space<vmem>>, vector<8x32xf32>
    tpu.vector_store %arg11[%c24, %c0_24], %97 {strides = array<i32>} : memref<64x32xf32, #tpu.memory_space<vmem>>, vector<8x32xf32>,
    %99 = vector.extract_strided_slice %11 {offsets = [32, 0], sizes = [8, 128], strides = [1, 1]} : vector<64x128xf32> to vector<8x128xf32>
    %100 = arith.truncf %97 : vector<8x32xf32> to vector<8x32xbf16>
    %cst_25 = arith.constant dense<0.000000e+00> : vector<8x128xf32>
    %101 = tpu.matmul %100, %12, %cst_25 {dimension_numbers = #tpu.dot_dimension_numbers<[1], [0], [0], [1], [0, 0, 1, 1], [], []>} : vector<8x32xbf16>, vector<32x128xbf16>, vector<8x128xf32> -> vector<8x128xf32>
    %102 = arith.addf %99, %101 : vector<8x128xf32>
    %103 = arith.negf %102 : vector<8x128xf32>
    %104 = math.exp %103 : vector<8x128xf32>
    %cst_26 = arith.constant 1.000000e+00 : f32
    %105 = vector.broadcast %cst_26 : f32 to vector<8x128xf32>
    %106 = arith.addf %105, %104 : vector<8x128xf32>
    %107 = arith.divf %105, %106 : vector<8x128xf32>
    %108 = math.tanh %102 : vector<8x128xf32>
    %109 = arith.select %5, %107, %108 : vector<8x128xi1>, vector<8x128xf32>
    %110 = vector.extract_strided_slice %109 {offsets = [0, 0], sizes = [8, 32], strides = [1, 1]} : vector<8x128xf32> to vector<8x32xf32>
    %111 = vector.extract_strided_slice %109 {offsets = [0, 32], sizes = [8, 32], strides = [1, 1]} : vector<8x128xf32> to vector<8x32xf32>
    %112 = vector.extract_strided_slice %109 {offsets = [0, 64], sizes = [8, 32], strides = [1, 1]} : vector<8x128xf32> to vector<8x32xf32>
    %113 = vector.extract_strided_slice %109 {offsets = [0, 96], sizes = [8, 32], strides = [1, 1]} : vector<8x128xf32> to vector<8x32xf32>
    %114 = arith.mulf %111, %95 : vector<8x32xf32>
    %115 = arith.mulf %110, %113 : vector<8x32xf32>
    %116 = arith.addf %114, %115 : vector<8x32xf32>
    %117 = math.tanh %116 : vector<8x32xf32>
    %118 = arith.mulf %112, %117 : vector<8x32xf32>
    %c32 = arith.constant 32 : index
    %c0_27 = arith.constant 0 : index
    %119 = vector.load %arg11[%c32, %c0_27] : memref<64x32xf32, #tpu.memory_space<vmem>>, vector<8x32xf32>
    tpu.vector_store %arg11[%c32, %c0_27], %118 {strides = array<i32>} : memref<64x32xf32, #tpu.memory_space<vmem>>, vector<8x32xf32>,
    %120 = vector.extract_strided_slice %11 {offsets = [40, 0], sizes = [8, 128], strides = [1, 1]} : vector<64x128xf32> to vector<8x128xf32>
    %121 = arith.truncf %118 : vector<8x32xf32> to vector<8x32xbf16>
    %cst_28 = arith.constant dense<0.000000e+00> : vector<8x128xf32>
    %122 = tpu.matmul %121, %12, %cst_28 {dimension_numbers = #tpu.dot_dimension_numbers<[1], [0], [0], [1], [0, 0, 1, 1], [], []>} : vector<8x32xbf16>, vector<32x128xbf16>, vector<8x128xf32> -> vector<8x128xf32>
    %123 = arith.addf %120, %122 : vector<8x128xf32>
    %124 = arith.negf %123 : vector<8x128xf32>
    %125 = math.exp %124 : vector<8x128xf32>
    %cst_29 = arith.constant 1.000000e+00 : f32
    %126 = vector.broadcast %cst_29 : f32 to vector<8x128xf32>
    %127 = arith.addf %126, %125 : vector<8x128xf32>
    %128 = arith.divf %126, %127 : vector<8x128xf32>
    %129 = math.tanh %123 : vector<8x128xf32>
    %130 = arith.select %5, %128, %129 : vector<8x128xi1>, vector<8x128xf32>
    %131 = vector.extract_strided_slice %130 {offsets = [0, 0], sizes = [8, 32], strides = [1, 1]} : vector<8x128xf32> to vector<8x32xf32>
    %132 = vector.extract_strided_slice %130 {offsets = [0, 32], sizes = [8, 32], strides = [1, 1]} : vector<8x128xf32> to vector<8x32xf32>
    %133 = vector.extract_strided_slice %130 {offsets = [0, 64], sizes = [8, 32], strides = [1, 1]} : vector<8x128xf32> to vector<8x32xf32>
    %134 = vector.extract_strided_slice %130 {offsets = [0, 96], sizes = [8, 32], strides = [1, 1]} : vector<8x128xf32> to vector<8x32xf32>
    %135 = arith.mulf %132, %116 : vector<8x32xf32>
    %136 = arith.mulf %131, %134 : vector<8x32xf32>
    %137 = arith.addf %135, %136 : vector<8x32xf32>
    %138 = math.tanh %137 : vector<8x32xf32>
    %139 = arith.mulf %133, %138 : vector<8x32xf32>
    %c40 = arith.constant 40 : index
    %c0_30 = arith.constant 0 : index
    %140 = vector.load %arg11[%c40, %c0_30] : memref<64x32xf32, #tpu.memory_space<vmem>>, vector<8x32xf32>
    tpu.vector_store %arg11[%c40, %c0_30], %139 {strides = array<i32>} : memref<64x32xf32, #tpu.memory_space<vmem>>, vector<8x32xf32>,
    %141 = vector.extract_strided_slice %11 {offsets = [48, 0], sizes = [8, 128], strides = [1, 1]} : vector<64x128xf32> to vector<8x128xf32>
    %142 = arith.truncf %139 : vector<8x32xf32> to vector<8x32xbf16>
    %cst_31 = arith.constant dense<0.000000e+00> : vector<8x128xf32>
    %143 = tpu.matmul %142, %12, %cst_31 {dimension_numbers = #tpu.dot_dimension_numbers<[1], [0], [0], [1], [0, 0, 1, 1], [], []>} : vector<8x32xbf16>, vector<32x128xbf16>, vector<8x128xf32> -> vector<8x128xf32>
    %144 = arith.addf %141, %143 : vector<8x128xf32>
    %145 = arith.negf %144 : vector<8x128xf32>
    %146 = math.exp %145 : vector<8x128xf32>
    %cst_32 = arith.constant 1.000000e+00 : f32
    %147 = vector.broadcast %cst_32 : f32 to vector<8x128xf32>
    %148 = arith.addf %147, %146 : vector<8x128xf32>
    %149 = arith.divf %147, %148 : vector<8x128xf32>
    %150 = math.tanh %144 : vector<8x128xf32>
    %151 = arith.select %5, %149, %150 : vector<8x128xi1>, vector<8x128xf32>
    %152 = vector.extract_strided_slice %151 {offsets = [0, 0], sizes = [8, 32], strides = [1, 1]} : vector<8x128xf32> to vector<8x32xf32>
    %153 = vector.extract_strided_slice %151 {offsets = [0, 32], sizes = [8, 32], strides = [1, 1]} : vector<8x128xf32> to vector<8x32xf32>
    %154 = vector.extract_strided_slice %151 {offsets = [0, 64], sizes = [8, 32], strides = [1, 1]} : vector<8x128xf32> to vector<8x32xf32>
    %155 = vector.extract_strided_slice %151 {offsets = [0, 96], sizes = [8, 32], strides = [1, 1]} : vector<8x128xf32> to vector<8x32xf32>
    %156 = arith.mulf %153, %137 : vector<8x32xf32>
    %157 = arith.mulf %152, %155 : vector<8x32xf32>
    %158 = arith.addf %156, %157 : vector<8x32xf32>
    %159 = math.tanh %158 : vector<8x32xf32>
    %160 = arith.mulf %154, %159 : vector<8x32xf32>
    %c48 = arith.constant 48 : index
    %c0_33 = arith.constant 0 : index
    %161 = vector.load %arg11[%c48, %c0_33] : memref<64x32xf32, #tpu.memory_space<vmem>>, vector<8x32xf32>
    tpu.vector_store %arg11[%c48, %c0_33], %160 {strides = array<i32>} : memref<64x32xf32, #tpu.memory_space<vmem>>, vector<8x32xf32>,
    %162 = vector.extract_strided_slice %11 {offsets = [56, 0], sizes = [8, 128], strides = [1, 1]} : vector<64x128xf32> to vector<8x128xf32>
    %163 = arith.truncf %160 : vector<8x32xf32> to vector<8x32xbf16>
    %cst_34 = arith.constant dense<0.000000e+00> : vector<8x128xf32>
    %164 = tpu.matmul %163, %12, %cst_34 {dimension_numbers = #tpu.dot_dimension_numbers<[1], [0], [0], [1], [0, 0, 1, 1], [], []>} : vector<8x32xbf16>, vector<32x128xbf16>, vector<8x128xf32> -> vector<8x128xf32>
    %165 = arith.addf %162, %164 : vector<8x128xf32>
    %166 = arith.negf %165 : vector<8x128xf32>
    %167 = math.exp %166 : vector<8x128xf32>
    %cst_35 = arith.constant 1.000000e+00 : f32
    %168 = vector.broadcast %cst_35 : f32 to vector<8x128xf32>
    %169 = arith.addf %168, %167 : vector<8x128xf32>
    %170 = arith.divf %168, %169 : vector<8x128xf32>
    %171 = math.tanh %165 : vector<8x128xf32>
    %172 = arith.select %5, %170, %171 : vector<8x128xi1>, vector<8x128xf32>
    %173 = vector.extract_strided_slice %172 {offsets = [0, 0], sizes = [8, 32], strides = [1, 1]} : vector<8x128xf32> to vector<8x32xf32>
    %174 = vector.extract_strided_slice %172 {offsets = [0, 32], sizes = [8, 32], strides = [1, 1]} : vector<8x128xf32> to vector<8x32xf32>
    %175 = vector.extract_strided_slice %172 {offsets = [0, 64], sizes = [8, 32], strides = [1, 1]} : vector<8x128xf32> to vector<8x32xf32>
    %176 = vector.extract_strided_slice %172 {offsets = [0, 96], sizes = [8, 32], strides = [1, 1]} : vector<8x128xf32> to vector<8x32xf32>
    %177 = arith.mulf %174, %158 : vector<8x32xf32>
    %178 = arith.mulf %173, %176 : vector<8x32xf32>
    %179 = arith.addf %177, %178 : vector<8x32xf32>
    %180 = math.tanh %179 : vector<8x32xf32>
    %181 = arith.mulf %175, %180 : vector<8x32xf32>
    %c56 = arith.constant 56 : index
    %c0_36 = arith.constant 0 : index
    %182 = vector.load %arg11[%c56, %c0_36] : memref<64x32xf32, #tpu.memory_space<vmem>>, vector<8x32xf32>
    tpu.vector_store %arg11[%c56, %c0_36], %181 {strides = array<i32>} : memref<64x32xf32, #tpu.memory_space<vmem>>, vector<8x32xf32>,
    %c0_37 = arith.constant 0 : index
    %c0_38 = arith.constant 0 : index
    %183 = vector.load %arg11[%c0_37, %c0_38] : memref<64x32xf32, #tpu.memory_space<vmem>>, vector<64x32xf32>
    %184 = arith.truncf %183 : vector<64x32xf32> to vector<64x32xbf16>
    %c0_39 = arith.constant 0 : index
    %c0_40 = arith.constant 0 : index
    %185 = vector.load %arg5[%c0_39, %c0_40] : memref<32x128xbf16, #tpu.memory_space<vmem>>, vector<32x128xbf16>
    %cst_41 = arith.constant dense<0.000000e+00> : vector<64x128xf32>
    %186 = tpu.matmul %184, %185, %cst_41 {dimension_numbers = #tpu.dot_dimension_numbers<[1], [0], [0], [1], [0, 0, 1, 1], [], []>} : vector<64x32xbf16>, vector<32x128xbf16>, vector<64x128xf32> -> vector<64x128xf32>
    %c0_42 = arith.constant 0 : index
    %c0_43 = arith.constant 0 : index
    %187 = vector.load %arg7[%c0_42, %c0_43] : memref<1x128xf32, #tpu.memory_space<vmem>>, vector<1x128xf32>
    %188 = vector.broadcast %187 : vector<1x128xf32> to vector<64x128xf32>
    %189 = arith.addf %186, %188 : vector<64x128xf32>
    %c0_44 = arith.constant 0 : index
    %c0_45 = arith.constant 0 : index
    %190 = vector.load %arg6[%c0_44, %c0_45] : memref<32x128xbf16, #tpu.memory_space<vmem>>, vector<32x128xbf16>
    %cst_46 = arith.constant 0.000000e+00 : f32
    %191 = vector.broadcast %cst_46 : f32 to vector<8x32xf32>
    %cst_47 = arith.constant 0.000000e+00 : f32
    %192 = vector.broadcast %cst_47 : f32 to vector<8x32xf32>
    %193 = vector.extract_strided_slice %189 {offsets = [0, 0], sizes = [8, 128], strides = [1, 1]} : vector<64x128xf32> to vector<8x128xf32>
    %194 = arith.truncf %191 : vector<8x32xf32> to vector<8x32xbf16>
    %cst_48 = arith.constant dense<0.000000e+00> : vector<8x128xf32>
    %195 = tpu.matmul %194, %190, %cst_48 {dimension_numbers = #tpu.dot_dimension_numbers<[1], [0], [0], [1], [0, 0, 1, 1], [], []>} : vector<8x32xbf16>, vector<32x128xbf16>, vector<8x128xf32> -> vector<8x128xf32>
    %196 = arith.addf %193, %195 : vector<8x128xf32>
    %197 = arith.negf %196 : vector<8x128xf32>
    %198 = math.exp %197 : vector<8x128xf32>
    %cst_49 = arith.constant 1.000000e+00 : f32
    %199 = vector.broadcast %cst_49 : f32 to vector<8x128xf32>
    %200 = arith.addf %199, %198 : vector<8x128xf32>
    %201 = arith.divf %199, %200 : vector<8x128xf32>
    %202 = math.tanh %196 : vector<8x128xf32>
    %203 = arith.select %5, %201, %202 : vector<8x128xi1>, vector<8x128xf32>
    %204 = vector.extract_strided_slice %203 {offsets = [0, 0], sizes = [8, 32], strides = [1, 1]} : vector<8x128xf32> to vector<8x32xf32>
    %205 = vector.extract_strided_slice %203 {offsets = [0, 32], sizes = [8, 32], strides = [1, 1]} : vector<8x128xf32> to vector<8x32xf32>
    %206 = vector.extract_strided_slice %203 {offsets = [0, 64], sizes = [8, 32], strides = [1, 1]} : vector<8x128xf32> to vector<8x32xf32>
    %207 = vector.extract_strided_slice %203 {offsets = [0, 96], sizes = [8, 32], strides = [1, 1]} : vector<8x128xf32> to vector<8x32xf32>
    %208 = arith.mulf %205, %192 : vector<8x32xf32>
    %209 = arith.mulf %204, %207 : vector<8x32xf32>
    %210 = arith.addf %208, %209 : vector<8x32xf32>
    %211 = math.tanh %210 : vector<8x32xf32>
    %212 = arith.mulf %206, %211 : vector<8x32xf32>
    %c0_50 = arith.constant 0 : index
    %c0_51 = arith.constant 0 : index
    %213 = vector.load %arg11[%c0_50, %c0_51] : memref<64x32xf32, #tpu.memory_space<vmem>>, vector<8x32xf32>
    tpu.vector_store %arg11[%c0_50, %c0_51], %212 {strides = array<i32>} : memref<64x32xf32, #tpu.memory_space<vmem>>, vector<8x32xf32>,
    %214 = vector.extract_strided_slice %189 {offsets = [8, 0], sizes = [8, 128], strides = [1, 1]} : vector<64x128xf32> to vector<8x128xf32>
    %215 = arith.truncf %212 : vector<8x32xf32> to vector<8x32xbf16>
    %cst_52 = arith.constant dense<0.000000e+00> : vector<8x128xf32>
    %216 = tpu.matmul %215, %190, %cst_52 {dimension_numbers = #tpu.dot_dimension_numbers<[1], [0], [0], [1], [0, 0, 1, 1], [], []>} : vector<8x32xbf16>, vector<32x128xbf16>, vector<8x128xf32> -> vector<8x128xf32>
    %217 = arith.addf %214, %216 : vector<8x128xf32>
    %218 = arith.negf %217 : vector<8x128xf32>
    %219 = math.exp %218 : vector<8x128xf32>
    %cst_53 = arith.constant 1.000000e+00 : f32
    %220 = vector.broadcast %cst_53 : f32 to vector<8x128xf32>
    %221 = arith.addf %220, %219 : vector<8x128xf32>
    %222 = arith.divf %220, %221 : vector<8x128xf32>
    %223 = math.tanh %217 : vector<8x128xf32>
    %224 = arith.select %5, %222, %223 : vector<8x128xi1>, vector<8x128xf32>
    %225 = vector.extract_strided_slice %224 {offsets = [0, 0], sizes = [8, 32], strides = [1, 1]} : vector<8x128xf32> to vector<8x32xf32>
    %226 = vector.extract_strided_slice %224 {offsets = [0, 32], sizes = [8, 32], strides = [1, 1]} : vector<8x128xf32> to vector<8x32xf32>
    %227 = vector.extract_strided_slice %224 {offsets = [0, 64], sizes = [8, 32], strides = [1, 1]} : vector<8x128xf32> to vector<8x32xf32>
    %228 = vector.extract_strided_slice %224 {offsets = [0, 96], sizes = [8, 32], strides = [1, 1]} : vector<8x128xf32> to vector<8x32xf32>
    %229 = arith.mulf %226, %210 : vector<8x32xf32>
    %230 = arith.mulf %225, %228 : vector<8x32xf32>
    %231 = arith.addf %229, %230 : vector<8x32xf32>
    %232 = math.tanh %231 : vector<8x32xf32>
    %233 = arith.mulf %227, %232 : vector<8x32xf32>
    %c8_54 = arith.constant 8 : index
    %c0_55 = arith.constant 0 : index
    %234 = vector.load %arg11[%c8_54, %c0_55] : memref<64x32xf32, #tpu.memory_space<vmem>>, vector<8x32xf32>
    tpu.vector_store %arg11[%c8_54, %c0_55], %233 {strides = array<i32>} : memref<64x32xf32, #tpu.memory_space<vmem>>, vector<8x32xf32>,
    %235 = vector.extract_strided_slice %189 {offsets = [16, 0], sizes = [8, 128], strides = [1, 1]} : vector<64x128xf32> to vector<8x128xf32>
    %236 = arith.truncf %233 : vector<8x32xf32> to vector<8x32xbf16>
    %cst_56 = arith.constant dense<0.000000e+00> : vector<8x128xf32>
    %237 = tpu.matmul %236, %190, %cst_56 {dimension_numbers = #tpu.dot_dimension_numbers<[1], [0], [0], [1], [0, 0, 1, 1], [], []>} : vector<8x32xbf16>, vector<32x128xbf16>, vector<8x128xf32> -> vector<8x128xf32>
    %238 = arith.addf %235, %237 : vector<8x128xf32>
    %239 = arith.negf %238 : vector<8x128xf32>
    %240 = math.exp %239 : vector<8x128xf32>
    %cst_57 = arith.constant 1.000000e+00 : f32
    %241 = vector.broadcast %cst_57 : f32 to vector<8x128xf32>
    %242 = arith.addf %241, %240 : vector<8x128xf32>
    %243 = arith.divf %241, %242 : vector<8x128xf32>
    %244 = math.tanh %238 : vector<8x128xf32>
    %245 = arith.select %5, %243, %244 : vector<8x128xi1>, vector<8x128xf32>
    %246 = vector.extract_strided_slice %245 {offsets = [0, 0], sizes = [8, 32], strides = [1, 1]} : vector<8x128xf32> to vector<8x32xf32>
    %247 = vector.extract_strided_slice %245 {offsets = [0, 32], sizes = [8, 32], strides = [1, 1]} : vector<8x128xf32> to vector<8x32xf32>
    %248 = vector.extract_strided_slice %245 {offsets = [0, 64], sizes = [8, 32], strides = [1, 1]} : vector<8x128xf32> to vector<8x32xf32>
    %249 = vector.extract_strided_slice %245 {offsets = [0, 96], sizes = [8, 32], strides = [1, 1]} : vector<8x128xf32> to vector<8x32xf32>
    %250 = arith.mulf %247, %231 : vector<8x32xf32>
    %251 = arith.mulf %246, %249 : vector<8x32xf32>
    %252 = arith.addf %250, %251 : vector<8x32xf32>
    %253 = math.tanh %252 : vector<8x32xf32>
    %254 = arith.mulf %248, %253 : vector<8x32xf32>
    %c16_58 = arith.constant 16 : index
    %c0_59 = arith.constant 0 : index
    %255 = vector.load %arg11[%c16_58, %c0_59] : memref<64x32xf32, #tpu.memory_space<vmem>>, vector<8x32xf32>
    tpu.vector_store %arg11[%c16_58, %c0_59], %254 {strides = array<i32>} : memref<64x32xf32, #tpu.memory_space<vmem>>, vector<8x32xf32>,
    %256 = vector.extract_strided_slice %189 {offsets = [24, 0], sizes = [8, 128], strides = [1, 1]} : vector<64x128xf32> to vector<8x128xf32>
    %257 = arith.truncf %254 : vector<8x32xf32> to vector<8x32xbf16>
    %cst_60 = arith.constant dense<0.000000e+00> : vector<8x128xf32>
    %258 = tpu.matmul %257, %190, %cst_60 {dimension_numbers = #tpu.dot_dimension_numbers<[1], [0], [0], [1], [0, 0, 1, 1], [], []>} : vector<8x32xbf16>, vector<32x128xbf16>, vector<8x128xf32> -> vector<8x128xf32>
    %259 = arith.addf %256, %258 : vector<8x128xf32>
    %260 = arith.negf %259 : vector<8x128xf32>
    %261 = math.exp %260 : vector<8x128xf32>
    %cst_61 = arith.constant 1.000000e+00 : f32
    %262 = vector.broadcast %cst_61 : f32 to vector<8x128xf32>
    %263 = arith.addf %262, %261 : vector<8x128xf32>
    %264 = arith.divf %262, %263 : vector<8x128xf32>
    %265 = math.tanh %259 : vector<8x128xf32>
    %266 = arith.select %5, %264, %265 : vector<8x128xi1>, vector<8x128xf32>
    %267 = vector.extract_strided_slice %266 {offsets = [0, 0], sizes = [8, 32], strides = [1, 1]} : vector<8x128xf32> to vector<8x32xf32>
    %268 = vector.extract_strided_slice %266 {offsets = [0, 32], sizes = [8, 32], strides = [1, 1]} : vector<8x128xf32> to vector<8x32xf32>
    %269 = vector.extract_strided_slice %266 {offsets = [0, 64], sizes = [8, 32], strides = [1, 1]} : vector<8x128xf32> to vector<8x32xf32>
    %270 = vector.extract_strided_slice %266 {offsets = [0, 96], sizes = [8, 32], strides = [1, 1]} : vector<8x128xf32> to vector<8x32xf32>
    %271 = arith.mulf %268, %252 : vector<8x32xf32>
    %272 = arith.mulf %267, %270 : vector<8x32xf32>
    %273 = arith.addf %271, %272 : vector<8x32xf32>
    %274 = math.tanh %273 : vector<8x32xf32>
    %275 = arith.mulf %269, %274 : vector<8x32xf32>
    %c24_62 = arith.constant 24 : index
    %c0_63 = arith.constant 0 : index
    %276 = vector.load %arg11[%c24_62, %c0_63] : memref<64x32xf32, #tpu.memory_space<vmem>>, vector<8x32xf32>
    tpu.vector_store %arg11[%c24_62, %c0_63], %275 {strides = array<i32>} : memref<64x32xf32, #tpu.memory_space<vmem>>, vector<8x32xf32>,
    %277 = vector.extract_strided_slice %189 {offsets = [32, 0], sizes = [8, 128], strides = [1, 1]} : vector<64x128xf32> to vector<8x128xf32>
    %278 = arith.truncf %275 : vector<8x32xf32> to vector<8x32xbf16>
    %cst_64 = arith.constant dense<0.000000e+00> : vector<8x128xf32>
    %279 = tpu.matmul %278, %190, %cst_64 {dimension_numbers = #tpu.dot_dimension_numbers<[1], [0], [0], [1], [0, 0, 1, 1], [], []>} : vector<8x32xbf16>, vector<32x128xbf16>, vector<8x128xf32> -> vector<8x128xf32>
    %280 = arith.addf %277, %279 : vector<8x128xf32>
    %281 = arith.negf %280 : vector<8x128xf32>
    %282 = math.exp %281 : vector<8x128xf32>
    %cst_65 = arith.constant 1.000000e+00 : f32
    %283 = vector.broadcast %cst_65 : f32 to vector<8x128xf32>
    %284 = arith.addf %283, %282 : vector<8x128xf32>
    %285 = arith.divf %283, %284 : vector<8x128xf32>
    %286 = math.tanh %280 : vector<8x128xf32>
    %287 = arith.select %5, %285, %286 : vector<8x128xi1>, vector<8x128xf32>
    %288 = vector.extract_strided_slice %287 {offsets = [0, 0], sizes = [8, 32], strides = [1, 1]} : vector<8x128xf32> to vector<8x32xf32>
    %289 = vector.extract_strided_slice %287 {offsets = [0, 32], sizes = [8, 32], strides = [1, 1]} : vector<8x128xf32> to vector<8x32xf32>
    %290 = vector.extract_strided_slice %287 {offsets = [0, 64], sizes = [8, 32], strides = [1, 1]} : vector<8x128xf32> to vector<8x32xf32>
    %291 = vector.extract_strided_slice %287 {offsets = [0, 96], sizes = [8, 32], strides = [1, 1]} : vector<8x128xf32> to vector<8x32xf32>
    %292 = arith.mulf %289, %273 : vector<8x32xf32>
    %293 = arith.mulf %288, %291 : vector<8x32xf32>
    %294 = arith.addf %292, %293 : vector<8x32xf32>
    %295 = math.tanh %294 : vector<8x32xf32>
    %296 = arith.mulf %290, %295 : vector<8x32xf32>
    %c32_66 = arith.constant 32 : index
    %c0_67 = arith.constant 0 : index
    %297 = vector.load %arg11[%c32_66, %c0_67] : memref<64x32xf32, #tpu.memory_space<vmem>>, vector<8x32xf32>
    tpu.vector_store %arg11[%c32_66, %c0_67], %296 {strides = array<i32>} : memref<64x32xf32, #tpu.memory_space<vmem>>, vector<8x32xf32>,
    %298 = vector.extract_strided_slice %189 {offsets = [40, 0], sizes = [8, 128], strides = [1, 1]} : vector<64x128xf32> to vector<8x128xf32>
    %299 = arith.truncf %296 : vector<8x32xf32> to vector<8x32xbf16>
    %cst_68 = arith.constant dense<0.000000e+00> : vector<8x128xf32>
    %300 = tpu.matmul %299, %190, %cst_68 {dimension_numbers = #tpu.dot_dimension_numbers<[1], [0], [0], [1], [0, 0, 1, 1], [], []>} : vector<8x32xbf16>, vector<32x128xbf16>, vector<8x128xf32> -> vector<8x128xf32>
    %301 = arith.addf %298, %300 : vector<8x128xf32>
    %302 = arith.negf %301 : vector<8x128xf32>
    %303 = math.exp %302 : vector<8x128xf32>
    %cst_69 = arith.constant 1.000000e+00 : f32
    %304 = vector.broadcast %cst_69 : f32 to vector<8x128xf32>
    %305 = arith.addf %304, %303 : vector<8x128xf32>
    %306 = arith.divf %304, %305 : vector<8x128xf32>
    %307 = math.tanh %301 : vector<8x128xf32>
    %308 = arith.select %5, %306, %307 : vector<8x128xi1>, vector<8x128xf32>
    %309 = vector.extract_strided_slice %308 {offsets = [0, 0], sizes = [8, 32], strides = [1, 1]} : vector<8x128xf32> to vector<8x32xf32>
    %310 = vector.extract_strided_slice %308 {offsets = [0, 32], sizes = [8, 32], strides = [1, 1]} : vector<8x128xf32> to vector<8x32xf32>
    %311 = vector.extract_strided_slice %308 {offsets = [0, 64], sizes = [8, 32], strides = [1, 1]} : vector<8x128xf32> to vector<8x32xf32>
    %312 = vector.extract_strided_slice %308 {offsets = [0, 96], sizes = [8, 32], strides = [1, 1]} : vector<8x128xf32> to vector<8x32xf32>
    %313 = arith.mulf %310, %294 : vector<8x32xf32>
    %314 = arith.mulf %309, %312 : vector<8x32xf32>
    %315 = arith.addf %313, %314 : vector<8x32xf32>
    %316 = math.tanh %315 : vector<8x32xf32>
    %317 = arith.mulf %311, %316 : vector<8x32xf32>
    %c40_70 = arith.constant 40 : index
    %c0_71 = arith.constant 0 : index
    %318 = vector.load %arg11[%c40_70, %c0_71] : memref<64x32xf32, #tpu.memory_space<vmem>>, vector<8x32xf32>
    tpu.vector_store %arg11[%c40_70, %c0_71], %317 {strides = array<i32>} : memref<64x32xf32, #tpu.memory_space<vmem>>, vector<8x32xf32>,
    %319 = vector.extract_strided_slice %189 {offsets = [48, 0], sizes = [8, 128], strides = [1, 1]} : vector<64x128xf32> to vector<8x128xf32>
    %320 = arith.truncf %317 : vector<8x32xf32> to vector<8x32xbf16>
    %cst_72 = arith.constant dense<0.000000e+00> : vector<8x128xf32>
    %321 = tpu.matmul %320, %190, %cst_72 {dimension_numbers = #tpu.dot_dimension_numbers<[1], [0], [0], [1], [0, 0, 1, 1], [], []>} : vector<8x32xbf16>, vector<32x128xbf16>, vector<8x128xf32> -> vector<8x128xf32>
    %322 = arith.addf %319, %321 : vector<8x128xf32>
    %323 = arith.negf %322 : vector<8x128xf32>
    %324 = math.exp %323 : vector<8x128xf32>
    %cst_73 = arith.constant 1.000000e+00 : f32
    %325 = vector.broadcast %cst_73 : f32 to vector<8x128xf32>
    %326 = arith.addf %325, %324 : vector<8x128xf32>
    %327 = arith.divf %325, %326 : vector<8x128xf32>
    %328 = math.tanh %322 : vector<8x128xf32>
    %329 = arith.select %5, %327, %328 : vector<8x128xi1>, vector<8x128xf32>
    %330 = vector.extract_strided_slice %329 {offsets = [0, 0], sizes = [8, 32], strides = [1, 1]} : vector<8x128xf32> to vector<8x32xf32>
    %331 = vector.extract_strided_slice %329 {offsets = [0, 32], sizes = [8, 32], strides = [1, 1]} : vector<8x128xf32> to vector<8x32xf32>
    %332 = vector.extract_strided_slice %329 {offsets = [0, 64], sizes = [8, 32], strides = [1, 1]} : vector<8x128xf32> to vector<8x32xf32>
    %333 = vector.extract_strided_slice %329 {offsets = [0, 96], sizes = [8, 32], strides = [1, 1]} : vector<8x128xf32> to vector<8x32xf32>
    %334 = arith.mulf %331, %315 : vector<8x32xf32>
    %335 = arith.mulf %330, %333 : vector<8x32xf32>
    %336 = arith.addf %334, %335 : vector<8x32xf32>
    %337 = math.tanh %336 : vector<8x32xf32>
    %338 = arith.mulf %332, %337 : vector<8x32xf32>
    %c48_74 = arith.constant 48 : index
    %c0_75 = arith.constant 0 : index
    %339 = vector.load %arg11[%c48_74, %c0_75] : memref<64x32xf32, #tpu.memory_space<vmem>>, vector<8x32xf32>
    tpu.vector_store %arg11[%c48_74, %c0_75], %338 {strides = array<i32>} : memref<64x32xf32, #tpu.memory_space<vmem>>, vector<8x32xf32>,
    %340 = vector.extract_strided_slice %189 {offsets = [56, 0], sizes = [8, 128], strides = [1, 1]} : vector<64x128xf32> to vector<8x128xf32>
    %341 = arith.truncf %338 : vector<8x32xf32> to vector<8x32xbf16>
    %cst_76 = arith.constant dense<0.000000e+00> : vector<8x128xf32>
    %342 = tpu.matmul %341, %190, %cst_76 {dimension_numbers = #tpu.dot_dimension_numbers<[1], [0], [0], [1], [0, 0, 1, 1], [], []>} : vector<8x32xbf16>, vector<32x128xbf16>, vector<8x128xf32> -> vector<8x128xf32>
    %343 = arith.addf %340, %342 : vector<8x128xf32>
    %344 = arith.negf %343 : vector<8x128xf32>
    %345 = math.exp %344 : vector<8x128xf32>
    %cst_77 = arith.constant 1.000000e+00 : f32
    %346 = vector.broadcast %cst_77 : f32 to vector<8x128xf32>
    %347 = arith.addf %346, %345 : vector<8x128xf32>
    %348 = arith.divf %346, %347 : vector<8x128xf32>
    %349 = math.tanh %343 : vector<8x128xf32>
    %350 = arith.select %5, %348, %349 : vector<8x128xi1>, vector<8x128xf32>
    %351 = vector.extract_strided_slice %350 {offsets = [0, 0], sizes = [8, 32], strides = [1, 1]} : vector<8x128xf32> to vector<8x32xf32>
    %352 = vector.extract_strided_slice %350 {offsets = [0, 32], sizes = [8, 32], strides = [1, 1]} : vector<8x128xf32> to vector<8x32xf32>
    %353 = vector.extract_strided_slice %350 {offsets = [0, 64], sizes = [8, 32], strides = [1, 1]} : vector<8x128xf32> to vector<8x32xf32>
    %354 = vector.extract_strided_slice %350 {offsets = [0, 96], sizes = [8, 32], strides = [1, 1]} : vector<8x128xf32> to vector<8x32xf32>
    %355 = arith.mulf %352, %336 : vector<8x32xf32>
    %356 = arith.mulf %351, %354 : vector<8x32xf32>
    %357 = arith.addf %355, %356 : vector<8x32xf32>
    %358 = math.tanh %357 : vector<8x32xf32>
    %359 = arith.mulf %353, %358 : vector<8x32xf32>
    %c56_78 = arith.constant 56 : index
    %c0_79 = arith.constant 0 : index
    %360 = vector.load %arg11[%c56_78, %c0_79] : memref<64x32xf32, #tpu.memory_space<vmem>>, vector<8x32xf32>
    tpu.vector_store %arg11[%c56_78, %c0_79], %359 {strides = array<i32>} : memref<64x32xf32, #tpu.memory_space<vmem>>, vector<8x32xf32>,
    %c0_80 = arith.constant 0 : index
    %c0_81 = arith.constant 0 : index
    %361 = vector.load %arg11[%c0_80, %c0_81] : memref<64x32xf32, #tpu.memory_space<vmem>>, vector<64x32xf32>
    %362 = arith.truncf %361 : vector<64x32xf32> to vector<64x32xbf16>
    %c0_82 = arith.constant 0 : index
    %c0_83 = arith.constant 0 : index
    %363 = vector.load %arg8[%c0_82, %c0_83] : memref<32x128xbf16, #tpu.memory_space<vmem>>, vector<32x128xbf16>
    %cst_84 = arith.constant dense<0.000000e+00> : vector<64x128xf32>
    %364 = tpu.matmul %362, %363, %cst_84 {dimension_numbers = #tpu.dot_dimension_numbers<[1], [0], [0], [1], [0, 0, 1, 1], [], []>} : vector<64x32xbf16>, vector<32x128xbf16>, vector<64x128xf32> -> vector<64x128xf32>
    %c0_85 = arith.constant 0 : index
    %c0_86 = arith.constant 0 : index
    %365 = vector.load %arg9[%c0_85, %c0_86] : memref<1x128xf32, #tpu.memory_space<vmem>>, vector<1x128xf32>
    %366 = vector.broadcast %365 : vector<1x128xf32> to vector<64x128xf32>
    %367 = arith.addf %364, %366 : vector<64x128xf32>
    %c0_87 = arith.constant 0 : index
    %c0_88 = arith.constant 0 : index
    %368 = vector.load %arg10[%c0_87, %c0_88] : memref<64x128xf32, #tpu.memory_space<vmem>>, vector<64x128xf32>
    tpu.vector_store %arg10[%c0_87, %c0_88], %367 {strides = array<i32>} : memref<64x128xf32, #tpu.memory_space<vmem>>, vector<64x128xf32>,
    return
  }
}

</mosaic_0001>

<bundles_post_ra>
// kernel: eq.8
= control target key start
LH: loop header
LB: loop body
LE: loop exit
PB: predicated region body
PF: predicated region fallthrough
CT: control target
= control target key end

     0   :  { %s67_s10 = smov 56   ;;  %s68_s11 = smov 40   ;;  %vm3_vm0 = vcmask 64512   ;;  %vm9_vm1 = vcmask 523712   ;;  %vm15_vm2 = vcmask 458112   ;;  %vm21_vm3 = vcmask 392512   ;;  %s111_s0 = inlined_call_operand.vmem [shape: s32[8,8], index: 0, kind: input, shape index: {}]   ;;  %s112_s1 = inlined_call_operand.vmem [shape: s32[64], index: 1, kind: output, shape index: {}]  }
   0x1   :  { %v53_v0 = vld [vmem:[%s111_s0 + $0x7] sm:$0x1]   ;;  %v55_v1 = vld [vmem:[%s111_s0 + $0x5] sm:$0x1]   ;;  %v54_v2 = vld [vmem:[%s111_s0 + $0x6] sm:$0x1]  }
   0x2   :  { %7 = vrot.lane.b32.xlu0 %v53_v0, %s67_s10  ;;  %19 = vrot.lane.b32.xlu1 %v55_v1, %s68_s11  ;;  %v56_v3 = vld [vmem:[%s111_s0 + $0x4] sm:$0x1]   ;;  %v2_v4 = vld [vmem:[%s111_s0] sm:$0x1]   ;;  %s69_s18 = smov 48   ;;  %s70_s19 = smov 32  }
   0x3   :  { %4 = vst.msk [vmem:[#allocation0] sm:$0x1] %vm3_vm0, %v2_v4   ;;  %v57_v5 = vld [vmem:[%s111_s0 + $0x3] sm:$0x1]   ;;  %v58_v6 = vld [vmem:[%s111_s0 + $0x2] sm:$0x1]  }
   0x4   :  { %s71_s24 = smov 24   ;;  %s72_s25 = smov 16   ;;  %v59_v7 = vld [vmem:[%s111_s0 + $0x1] sm:$0x1]   ;;  %vm27_vm4 = vcmask 326912   ;;  %vm33_vm5 = vcmask 261312  }
   0x5   :  { %s73_s0 = smov 8   ;;  %vm39_vm6 = vcmask 195712   ;;  %vm45_vm7 = vcmask 130112  }
   0x6   :  { %13 = vrot.lane.b32.xlu0 %v54_v2, %s69_s18  ;;  %25 = vrot.lane.b32.xlu1 %v56_v3, %s70_s19 }
   0xa   :  { %31 = vrot.lane.b32.xlu0 %v57_v5, %s71_s24  ;;  %37 = vrot.lane.b32.xlu1 %v58_v6, %s72_s25 }
   0xe   :  { %43 = vrot.lane.b32.xlu0 %v59_v7, %s73_s0 }
  0x74   :  { %v8_v8 = vpop.permute.xlu0 %7   ;;  %v20_v9 = vpop.permute.xlu1 %19  }
  0x75   :  { %10 = vst.msk [vmem:[#allocation0] sm:$0x1] %vm9_vm1, %v8_v8  }
  0x78   :  { %v14_v10 = vpop.permute.xlu0 %13   ;;  %v26_v11 = vpop.permute.xlu1 %25  }
  0x79   :  { %16 = vst.msk [vmem:[#allocation0] sm:$0x1] %vm15_vm2, %v14_v10  }
  0x7a   :  { %22 = vst.msk [vmem:[#allocation0] sm:$0x1] %vm21_vm3, %v20_v9  }
  0x7b   :  { %28 = vst.msk [vmem:[#allocation0] sm:$0x1] %vm27_vm4, %v26_v11  }
  0x7c   :  { %v32_v12 = vpop.permute.xlu0 %31   ;;  %v38_v13 = vpop.permute.xlu1 %37  }
  0x7d   :  { %34 = vst.msk [vmem:[#allocation0] sm:$0x1] %vm33_vm5, %v32_v12  }
  0x7e   :  { %40 = vst.msk [vmem:[#allocation0] sm:$0x1] %vm39_vm6, %v38_v13  }
  0x80   :  { %v44_v14 = vpop.permute.xlu0 %43  }
  0x81   :  { %46 = vst.msk [vmem:[#allocation0] sm:$0x1] %vm45_vm7, %v44_v14  }
  0x88   :  { %v50_v15 = vld [vmem:[#allocation0] sm:$0x1] }
  0x89   :  { %52 = vst [vmem:[%s112_s1] sm:$0x1] %v50_v15 }

// kernel: lstm_tagger_forward.1
= control target key start
LH: loop header
LB: loop body
LE: loop exit
PB: predicated region body
PF: predicated region fallthrough
CT: control target
= control target key end

     0   :  { %vm76_vm0 = vcmask 162816   ;;  %vm89_vm1 = vcmask 1041408   ;;  %v2224_v8 = vmov 0.0   ;;  %vm180_vm2 = vcmask 130048   ;;  %s2228_s29 = smov 64   ;;  %s2745_s1 = inlined_call_operand.vmem [shape: bf16[20,16], index: 1, kind: input, shape index: {}]   ;;  %s2746_s0 = inlined_call_operand.vmem [shape: bf16[64,20], index: 0, kind: input, shape index: {}]   ;;  %s2747_s2 = inlined_call_operand.vmem [shape: bf16[16,128], index: 2, kind: input, shape index: {}]   ;;  %s2748_s3 = inlined_call_operand.vmem [shape: bf16[32,128], index: 3, kind: input, shape index: {}]   ;;  %s2749_s4 = inlined_call_operand.vmem [shape: f32[1,128], index: 4, kind: input, shape index: {}]   ;;  %s2750_s5 = inlined_call_operand.vmem [shape: bf16[32,128], index: 5, kind: input, shape index: {}]   ;;  %s2751_s6 = inlined_call_operand.vmem [shape: bf16[32,128], index: 6, kind: input, shape index: {}]   ;;  %s2752_s7 = inlined_call_operand.vmem [shape: f32[1,128], index: 7, kind: input, shape index: {}]   ;;  %s2753_s8 = inlined_call_operand.vmem [shape: bf16[32,128], index: 8, kind: input, shape index: {}]   ;;  %s2754_s9 = inlined_call_operand.vmem [shape: f32[1,128], index: 9, kind: input, shape index: {}]   ;;  %s2755_s10 = inlined_call_operand.vmem [shape: f32[64,128], index: 10, kind: output, shape index: {}]  }
   0x1   :  { %v2081_v0 = vld [vmem:[%s2745_s1] sm:$0xff]   ;;  %v2082_v1 = vld [vmem:[%s2745_s1 + $0x8] ss:$0 sps:$4 sm:$0x33]   ;;  %v2085_v5 = vld [vmem:[%s2746_s0 + $0x10] sm:$0xff]   ;;  %vm2225_vm3 = vmmov 0   ;;  %v158_v49 = vlaneseq }
   0x2   :  { %v2083_v2 = vld [vmem:[%s2746_s0] sm:$0xff]   ;;  %1899 = vmatprep.subr.bf16.mxu0 %v2081_v0  ;;  %v91_v3 = vsel %vm89_vm1, %v2082_v1, 0  ;;  %v2084_v4 = vld [vmem:[%s2746_s0 + $0x8] sm:$0xff]   ;;  %v2086_v6 = vld [vmem:[%s2746_s0 + $0x18] sm:$0xff]   ;;  %v2226_v23 = vmov 0   ;;  %vm274_vm5 = vcmask 261120  }
   0x3   :  { %1900 = vmatpush3.bf16.msra.mxu0 %v2081_v0  ;;  %1903 = vmatprep.mubr.msk.bf16.mxu0 %vm76_vm0, %v2083_v2  ;;  %v2087_v7 = vld [vmem:[%s2747_s2] sm:$0xff]   ;;  %v2325_v19 = vld [vmem:[%s2748_s3 + $0x8] sm:$0xff]   ;;  %v2359_v50 = vand.u32 127, %v158_v49 }
   0x4   :  { %2075 = vmatprep.subr.msk.bf16.mxu0 %vm89_vm1, %v2082_v1  ;;  %2073 = vmatprep.subr.bf16.mxu1 %v2087_v7  ;;  %v2315_v15 = vld [vmem:[%s2748_s3] sm:$0xff]  }
   0x5   :  { %2074 = vmatpush3.bf16.msra.mxu1 %v2087_v7  ;;  %v1774_v24 = vld [vmem:[%s2749_s4] ss:$0 sm:$0xff]  ;;  %vm160_vm4 = vcmp.lt.s32.totalorder %v2359_v50, 96  ;;  %s2227_s4 = smov 32  }
   0x6   :  { %1921 = vmatprep.subr.bf16.mxu1 %v2224_v8 }
   0x7   :  { %1902 = vmatpush3.bf16.msra.mxu0 %v91_v3 }
   0x8   :  { %1911 = vmatprep.subr.bf16.mxu0 %v2087_v7 }
   0xa   :  { %1904 = vmatmul.mubr.msk.bf16.vlgmr.msra.gmra.mrb[0].mxu0 %vm76_vm0, %v2084_v4 }
   0xb   :  { %1907 = vmatprep.mubr.msk.bf16.mxu0 %vm76_vm0, %v2085_v5  ;;  %1912 = vmatpush3.bf16.msra.mxu0 %v2087_v7 }
   0xc   :  { %1929 = vmatprep.subr.bf16.mxu0 %v2224_v8 }
  0x12   :  { %1908 = vmatmul.mubr.msk.bf16.gmra.mrb[4].mxu0 %vm76_vm0, %v2086_v6 }
  0xdd   :  { %v1905_v9 = vpop.f32.mrb[0].mxu0 }
  0xde   :  { %v127_v10 = vpop.f32.mrb[1].mxu0 }
  0xdf   :  { %v1906_v11 = vpop.f32.mrb[2].mxu0 }
  0xe0   :  { %v162_v12 = vpack.c.bf16 %v1906_v11, %v1905_v9  ;;  %v130_v13 = vpop.f32.mrb[3].mxu0 }
  0xe1   :  { %v161_v14 = vpack.c.bf16 %v130_v13, %v127_v10 }
  0xe3   :  { %1913 = vmatprep.mubr.msk.bf16.mxu0 %vm180_vm2, %v161_v14 }
  0xe4   :  { %1914 = vmatmul.mubr.msk.bf16.vlgmr.msra.gmra.mrb[8].mxu0 %vm180_vm2, %v162_v12 }
  0xe5   :  { %v1909_v16 = vpop.f32.mrb[4].mxu0  ;;  %1930 = vmatpush3.bf16.msra.mxu0 %v2315_v15  ;;  %1933 = vmatprep.mubr.msk.bf16.mxu0 %vm2225_vm3, %v2224_v8 }
  0xe6   :  { %v143_v17 = vpop.f32.mrb[5].mxu0  ;;  %1931 = vmatprep.subr.bf16.mxu0 %v2224_v8 }
  0xe7   :  { %v1910_v18 = vpop.f32.mrb[6].mxu0 }
  0xe8   :  { %v164_v20 = vpack.c.bf16 %v1910_v18, %v1909_v16  ;;  %v146_v21 = vpop.f32.mrb[7].mxu0 }
  0xe9   :  { %v163_v22 = vpack.c.bf16 %v146_v21, %v143_v17  ;;  %1932 = vmatpush3.bf16.msra.mxu0 %v2325_v19 }
  0xea   :  { %1945 = vmatprep.subr.bf16.mxu0 %v2224_v8 }
  0xeb   :  { %1917 = vmatprep.mubr.msk.bf16.mxu1 %vm180_vm2, %v163_v22 }
  0xec   :  { %1918 = vmatmul.mubr.msk.bf16.vlgmr.msra.gmra.mrb[0].mxu1 %vm180_vm2, %v164_v20 }
  0xed   :  { %1922 = vmatpush3.bf16.msra.mxu1 %v2315_v15  ;;  %1925 = vmatprep.mubr.msk.bf16.mxu1 %vm2225_vm3, %v2224_v8 }
  0xee   :  { %1923 = vmatprep.subr.bf16.mxu1 %v2224_v8 }
  0xf1   :  { %1924 = vmatpush3.bf16.msra.mxu1 %v2325_v19 }
  0xf2   :  { %1937 = vmatprep.subr.bf16.mxu1 %v2224_v8 }
  0xf4   :  { %1926 = vmatmul.mubr.bf16.vlgmr.msra.gmra.mrb[4].mxu1 %v2226_v23 }
  0xf5   :  { %1938 = vmatpush3.bf16.msra.mxu1 %v2315_v15  ;;  %1941 = vmatprep.mubr.msk.bf16.mxu1 %vm2225_vm3, %v2224_v8 }
  0xf6   :  { %1939 = vmatprep.subr.bf16.mxu1 %v2224_v8 }
  0xf9   :  { %1940 = vmatpush3.bf16.msra.mxu1 %v2325_v19 }
  0xfa   :  { %1953 = vmatprep.subr.bf16.mxu1 %v2224_v8 }
 0x1b7   :  { %v1915_v25 = vpop.f32.mrb[8].mxu0 }
 0x1b8   :  { %v2347_v26 = vadd.f32 %v1915_v25, %v1774_v24  ;;  %v227_v27 = vpop.f32.mrb[9].mxu0 }
 0x1b9   :  { %v1916_v28 = vpop.f32.mrb[10].mxu0  ;;  %v228_v40 = vadd.f32 %v1774_v24, %v227_v27 }
 0x1ba   :  { %v2349_v29 = vadd.f32 %v1916_v28, %v1774_v24  ;;  %v230_v30 = vpop.f32.mrb[11].mxu0 }
 0x1bb   :  { %v231_v31 = vadd.f32 %v1774_v24, %v230_v30 }
 0x1bf   :  { %v1919_v32 = vpop.f32.mrb[0].mxu1 }
 0x1c0   :  { %v2351_v33 = vadd.f32 %v1919_v32, %v1774_v24  ;;  %v243_v34 = vpop.f32.mrb[1].mxu1 }
 0x1c1   :  { %v2353_v35 = vadd.f32 %v1774_v24, %v243_v34  ;;  %v1920_v36 = vpop.f32.mrb[2].mxu1 }
 0x1c2   :  { %v2355_v37 = vadd.f32 %v1920_v36, %v1774_v24  ;;  %v246_v38 = vpop.f32.mrb[3].mxu1 }
 0x1c3   :  { %v2357_v39 = vadd.f32 %v1774_v24, %v246_v38 }
 0x1c7   :  { %v312_v41 = vpop.f32.mrb[4].mxu1 }
 0x1c8   :  { %v318_v42 = vadd.f32 %v312_v41, %v228_v40  ;;  %v1927_v43 = vpop.f32.mrb[5].mxu1 }
 0x1c9   :  { %v315_v44 = vpop.f32.mrb[6].mxu1 }
 0x1ca   :  { %v1782_v45 = vmul.f32 -1.442695, %v318_v42  ;;  %v1928_v46 = vpop.f32.mrb[7].mxu1 }
 0x1cc   :  { %2096 = vpow2.f32 %v1782_v45 }
 0x1cd   :  { %2098 = vtanh.f32 %v318_v42 }
 0x1d6   :  { %v2097_v47 = vpop.eup %2096 }
 0x1d7   :  { %v322_v48 = vadd.f32 1.0, %v2097_v47  ;;  %v2099_v51 = vpop.eup %2098 }
 0x1d9   :  { %2100 = vrcp.f32 %v322_v48 }
 0x1e3   :  { %v2101_v52 = vpop.eup %2100 }
 0x1e4   :  { %v326_v53 = vsel %vm160_vm4, %v2101_v52, %v2099_v51 }
 0x1e5   :  { %329 = vrot.lane.b32.xlu0 %v326_v53, %s2227_s4  ;;  %v327_v56 = vmul.f32 0.0, %v326_v53 }
 0x257   :  { %v330_v54 = vpop.permute.xlu0 %329 }
 0x258   :  { %v332_v55 = vmul.f32 %v330_v54, %v326_v53 }
 0x25a   :  { %334 = vrot.lane.b32.xlu0 %v332_v55, %s2227_s4 }
 0x2cc   :  { %v335_v57 = vpop.permute.xlu0 %334 }
 0x2cd   :  { %v337_v58 = vadd.f32 %v335_v57, %v327_v56 }
 0x2cf   :  { %2102 = vtanh.f32 %v337_v58 }
 0x2d9   :  { %v2103_v59 = vpop.eup %2102 }
 0x2da   :  { %340 = vrot.lane.b32.xlu1 %v2103_v59, %s2227_s4 }
 0x34c   :  { %v341_v60 = vpop.permute.xlu1 %340 }
 0x34d   :  { %v2367_v61 = vmul.f32 %v341_v60, %v326_v53 }
 0x34f   :  { %v349_v62 = vpack.c.bf16 %v2367_v61, %v2367_v61 }
 0x351   :  { %351 = vrot.lane.b32.xlu1 %v349_v62, %s2228_s29 }
 0x3c3   :  { %v352_v63 = vpop.permute.xlu1 %351 }
 0x3c4   :  { %1934 = vmatmul.mubr.msk.bf16.vlgmr.msra.gmra.mrb[12].mxu0 %vm274_vm5, %v352_v63 }
 0x3c5   :  { %1946 = vmatpush3.bf16.msra.mxu0 %v2315_v15  ;;  %1949 = vmatprep.mubr.msk.bf16.mxu0 %vm2225_vm3, %v2224_v8 }
 0x3c6   :  { %1947 = vmatprep.subr.bf16.mxu0 %v2224_v8 }
 0x3c9   :  { %1948 = vmatpush3.bf16.msra.mxu0 %v2325_v19 }
 0x3ca   :  { %1961 = vmatprep.subr.bf16.mxu0 %v2224_v8 }
 0x497   :  { %v390_v0 = vpop.f32.mrb[12].mxu0 }
 0x498   :  { %v396_v1 = vadd.f32 %v390_v0, %v231_v31  ;;  %v1935_v2 = vpop.f32.mrb[13].mxu0 }
 0x499   :  { %v393_v3 = vpop.f32.mrb[14].mxu0 }
 0x49a   :  { %v1784_v4 = vmul.f32 -1.442695, %v396_v1  ;;  %v1936_v5 = vpop.f32.mrb[15].mxu0 }
 0x49c   :  { %2104 = vpow2.f32 %v1784_v4 }
 0x49d   :  { %2106 = vtanh.f32 %v396_v1 }
 0x4a6   :  { %v2105_v6 = vpop.eup %2104 }
 0x4a7   :  { %v400_v7 = vadd.f32 1.0, %v2105_v6  ;;  %v2107_v9 = vpop.eup %2106 }
 0x4a9   :  { %2108 = vrcp.f32 %v400_v7 }
 0x4b3   :  { %v2109_v10 = vpop.eup %2108 }
 0x4b4   :  { %v404_v11 = vsel %vm160_vm4, %v2109_v10, %v2107_v9 }
 0x4b5   :  { %407 = vrot.lane.b32.xlu0 %v404_v11, %s2227_s4  ;;  %v405_v14 = vmul.f32 %v404_v11, %v337_v58 }
 0x527   :  { %v408_v12 = vpop.permute.xlu0 %407 }
 0x528   :  { %v410_v13 = vmul.f32 %v408_v12, %v404_v11 }
 0x52a   :  { %412 = vrot.lane.b32.xlu1 %v410_v13, %s2227_s4 }
 0x59c   :  { %v413_v16 = vpop.permute.xlu1 %412 }
 0x59d   :  { %v415_v17 = vadd.f32 %v413_v16, %v405_v14 }
 0x59f   :  { %2110 = vtanh.f32 %v415_v17 }
 0x5a9   :  { %v2111_v18 = vpop.eup %2110 }
 0x5aa   :  { %418 = vrot.lane.b32.xlu0 %v2111_v18, %s2227_s4 }
 0x61c   :  { %v419_v20 = vpop.permute.xlu0 %418 }
 0x61d   :  { %v2384_v21 = vmul.f32 %v419_v20, %v404_v11 }
 0x61f   :  { %v427_v22 = vpack.c.bf16 %v2384_v21, %v2384_v21 }
 0x621   :  { %429 = vrot.lane.b32.xlu1 %v427_v22, %s2228_s29 }
 0x693   :  { %v430_v24 = vpop.permute.xlu1 %429 }
 0x694   :  { %1942 = vmatmul.mubr.msk.bf16.vlgmr.msra.gmra.mrb[8].mxu1 %vm274_vm5, %v430_v24 }
 0x695   :  { %1954 = vmatpush3.bf16.msra.mxu1 %v2315_v15  ;;  %1957 = vmatprep.mubr.msk.bf16.mxu1 %vm2225_vm3, %v2224_v8 }
 0x696   :  { %1955 = vmatprep.subr.bf16.mxu1 %v2224_v8 }
 0x699   :  { %1956 = vmatpush3.bf16.msra.mxu1 %v2325_v19 }
 0x69a   :  { %1969 = vmatprep.subr.bf16.mxu1 %v2224_v8 }
 0x767   :  { %v468_v25 = vpop.f32.mrb[8].mxu1 }
 0x768   :  { %v474_v27 = vadd.f32 %v468_v25, %v2347_v26  ;;  %v1943_v28 = vpop.f32.mrb[9].mxu1 }
 0x769   :  { %v471_v30 = vpop.f32.mrb[10].mxu1 }
 0x76a   :  { %v1786_v31 = vmul.f32 -1.442695, %v474_v27  ;;  %v1944_v32 = vpop.f32.mrb[11].mxu1 }
 0x76c   :  { %2112 = vpow2.f32 %v1786_v31 }
 0x76d   :  { %2114 = vtanh.f32 %v474_v27 }
 0x776   :  { %v2113_v34 = vpop.eup %2112 }
 0x777   :  { %v478_v36 = vadd.f32 1.0, %v2113_v34  ;;  %v2115_v38 = vpop.eup %2114 }
 0x779   :  { %2116 = vrcp.f32 %v478_v36 }
 0x783   :  { %v2117_v40 = vpop.eup %2116 }
 0x784   :  { %v482_v41 = vsel %vm160_vm4, %v2117_v40, %v2115_v38 }
 0x785   :  { %485 = vrot.lane.b32.xlu0 %v482_v41, %s2227_s4  ;;  %v483_v26 = vmul.f32 %v482_v41, %v415_v17 }
 0x7f7   :  { %v486_v42 = vpop.permute.xlu0 %485 }
 0x7f8   :  { %v488_v43 = vmul.f32 %v486_v42, %v482_v41 }
 0x7fa   :  { %490 = vrot.lane.b32.xlu1 %v488_v43, %s2227_s4 }
 0x86c   :  { %v491_v44 = vpop.permute.xlu1 %490 }
 0x86d   :  { %v493_v45 = vadd.f32 %v491_v44, %v483_v26 }
 0x86f   :  { %2118 = vtanh.f32 %v493_v45 }
 0x879   :  { %v2119_v46 = vpop.eup %2118 }
 0x87a   :  { %496 = vrot.lane.b32.xlu0 %v2119_v46, %s2227_s4 }
 0x8ec   :  { %v497_v47 = vpop.permute.xlu0 %496 }
 0x8ed   :  { %v2402_v48 = vmul.f32 %v497_v47, %v482_v41 }
 0x8ef   :  { %v505_v49 = vpack.c.bf16 %v2402_v48, %v2402_v48 }
 0x8f1   :  { %507 = vrot.lane.b32.xlu1 %v505_v49, %s2228_s29 }
 0x963   :  { %v508_v51 = vpop.permute.xlu1 %507 }
 0x964   :  { %1950 = vmatmul.mubr.msk.bf16.vlgmr.msra.gmra.mrb[16].mxu0 %vm274_vm5, %v508_v51 }
 0x965   :  { %1962 = vmatpush3.bf16.msra.mxu0 %v2315_v15  ;;  %1965 = vmatprep.mubr.msk.bf16.mxu0 %vm2225_vm3, %v2224_v8 }
 0x966   :  { %1963 = vmatprep.subr.bf16.mxu0 %v2224_v8 }
 0x969   :  { %1964 = vmatpush3.bf16.msra.mxu0 %v2325_v19 }
 0x96a   :  { %1977 = vmatprep.subr.bf16.mxu0 %v2224_v8 }
 0xa37   :  { %v546_v52 = vpop.f32.mrb[16].mxu0 }
 0xa38   :  { %v552_v53 = vadd.f32 %v546_v52, %v2349_v29  ;;  %v1951_v54 = vpop.f32.mrb[17].mxu0 }
 0xa39   :  { %v549_v55 = vpop.f32.mrb[18].mxu0 }
 0xa3a   :  { %v1788_v56 = vmul.f32 -1.442695, %v552_v53  ;;  %v1952_v57 = vpop.f32.mrb[19].mxu0 }
 0xa3c   :  { %2120 = vpow2.f32 %v1788_v56 }
 0xa3d   :  { %2122 = vtanh.f32 %v552_v53 }
 0xa46   :  { %v2121_v58 = vpop.eup %2120 }
 0xa47   :  { %v556_v59 = vadd.f32 1.0, %v2121_v58  ;;  %v2123_v60 = vpop.eup %2122 }
 0xa49   :  { %2124 = vrcp.f32 %v556_v59 }
 0xa53   :  { %v2125_v62 = vpop.eup %2124 }
 0xa54   :  { %v560_v63 = vsel %vm160_vm4, %v2125_v62, %v2123_v60 }
 0xa55   :  { %563 = vrot.lane.b32.xlu0 %v560_v63, %s2227_s4  ;;  %v561_v29 = vmul.f32 %v560_v63, %v493_v45 }
 0xac7   :  { %v564_v0 = vpop.permute.xlu0 %563 }
 0xac8   :  { %v566_v1 = vmul.f32 %v564_v0, %v560_v63 }
 0xaca   :  { %568 = vrot.lane.b32.xlu1 %v566_v1, %s2227_s4 }
 0xb3c   :  { %v569_v2 = vpop.permute.xlu1 %568 }
 0xb3d   :  { %v571_v3 = vadd.f32 %v569_v2, %v561_v29 }
 0xb3f   :  { %2126 = vtanh.f32 %v571_v3 }
 0xb49   :  { %v2127_v4 = vpop.eup %2126 }
 0xb4a   :  { %574 = vrot.lane.b32.xlu0 %v2127_v4, %s2227_s4 }
 0xbbc   :  { %v575_v5 = vpop.permute.xlu0 %574 }
 0xbbd   :  { %v2420_v6 = vmul.f32 %v575_v5, %v560_v63 }
 0xbbf   :  { %v583_v7 = vpack.c.bf16 %v2420_v6, %v2420_v6 }
 0xbc1   :  { %585 = vrot.lane.b32.xlu1 %v583_v7, %s2228_s29 }
 0xc33   :  { %v586_v9 = vpop.permute.xlu1 %585 }
 0xc34   :  { %1958 = vmatmul.mubr.msk.bf16.vlgmr.msra.gmra.mrb[12].mxu1 %vm274_vm5, %v586_v9 }
 0xc35   :  { %1970 = vmatpush3.bf16.msra.mxu1 %v2315_v15  ;;  %1973 = vmatprep.mubr.msk.bf16.mxu1 %vm2225_vm3, %v2224_v8 }
 0xc36   :  { %1971 = vmatprep.subr.bf16.mxu1 %v2224_v8 }
 0xc39   :  { %1972 = vmatpush3.bf16.msra.mxu1 %v2325_v19 }
 0xd07   :  { %v624_v10 = vpop.f32.mrb[12].mxu1 }
 0xd08   :  { %v630_v11 = vadd.f32 %v624_v10, %v2353_v35  ;;  %v1959_v12 = vpop.f32.mrb[13].mxu1 }
 0xd09   :  { %v627_v13 = vpop.f32.mrb[14].mxu1 }
 0xd0a   :  { %v1790_v14 = vmul.f32 -1.442695, %v630_v11  ;;  %v1960_v16 = vpop.f32.mrb[15].mxu1 }
 0xd0c   :  { %2128 = vpow2.f32 %v1790_v14  ;;  %v2090_v14 = vld [vmem:[%s2750_s5] sm:$0xff]  }
 0xd0d   :  { %2130 = vtanh.f32 %v630_v11  ;;  %1985 = vmatprep.subr.bf16.mxu1 %v2090_v14 }
 0xd16   :  { %v2129_v17 = vpop.eup %2128 }
 0xd17   :  { %v634_v18 = vadd.f32 1.0, %v2129_v17  ;;  %v2131_v20 = vpop.eup %2130 }
 0xd19   :  { %2132 = vrcp.f32 %v634_v18 }
 0xd23   :  { %v2133_v22 = vpop.eup %2132 }
 0xd24   :  { %v638_v24 = vsel %vm160_vm4, %v2133_v22, %v2131_v20 }
 0xd25   :  { %641 = vrot.lane.b32.xlu0 %v638_v24, %s2227_s4  ;;  %v639_v35 = vmul.f32 %v638_v24, %v571_v3 }
 0xd97   :  { %v642_v25 = vpop.permute.xlu0 %641 }
 0xd98   :  { %v644_v27 = vmul.f32 %v642_v25, %v638_v24 }
 0xd9a   :  { %646 = vrot.lane.b32.xlu1 %v644_v27, %s2227_s4 }
 0xe0c   :  { %v647_v28 = vpop.permute.xlu1 %646 }
 0xe0d   :  { %v649_v30 = vadd.f32 %v647_v28, %v639_v35  ;;  %v2498_v28 = vld [vmem:[%s2751_s6] sm:$0xff]  }
 0xe0f   :  { %2134 = vtanh.f32 %v649_v30 }
 0xe19   :  { %v2135_v31 = vpop.eup %2134 }
 0xe1a   :  { %652 = vrot.lane.b32.xlu0 %v2135_v31, %s2227_s4 }
 0xe8c   :  { %v653_v32 = vpop.permute.xlu0 %652 }
 0xe8d   :  { %v2437_v34 = vmul.f32 %v653_v32, %v638_v24 }
 0xe8f   :  { %v661_v36 = vpack.c.bf16 %v2437_v34, %v2437_v34 }
 0xe91   :  { %663 = vrot.lane.b32.xlu1 %v661_v36, %s2228_s29 }
 0xf03   :  { %v664_v38 = vpop.permute.xlu1 %663 }
 0xf04   :  { %1966 = vmatmul.mubr.msk.bf16.vlgmr.msra.gmra.mrb[20].mxu0 %vm274_vm5, %v664_v38 }
 0xf05   :  { %1978 = vmatpush3.bf16.msra.mxu0 %v2315_v15  ;;  %1981 = vmatprep.mubr.msk.bf16.mxu0 %vm2225_vm3, %v2224_v8 }
 0xf06   :  { %1979 = vmatprep.subr.bf16.mxu0 %v2224_v8 }
 0xf09   :  { %1980 = vmatpush3.bf16.msra.mxu0 %v2325_v19 }
 0xf0a   :  { %1997 = vmatprep.subr.bf16.mxu0 %v2224_v8 }
 0xfd7   :  { %v702_v40 = vpop.f32.mrb[20].mxu0 }
 0xfd8   :  { %v708_v41 = vadd.f32 %v702_v40, %v2357_v39  ;;  %v1967_v42 = vpop.f32.mrb[21].mxu0 }
 0xfd9   :  { %v705_v43 = vpop.f32.mrb[22].mxu0 }
 0xfda   :  { %v1792_v26 = vmul.f32 -1.442695, %v708_v41  ;;  %v1968_v44 = vpop.f32.mrb[23].mxu0 }
 0xfdb   :  { %v2534_v44 = vld [vmem:[%s2752_s7] ss:$0 sm:$0xff] }
 0xfdc   :  { %2136 = vpow2.f32 %v1792_v26 }
 0xfdd   :  { %2138 = vtanh.f32 %v708_v41 }
 0xfe6   :  { %v2137_v45 = vpop.eup %2136 }
 0xfe7   :  { %v712_v46 = vadd.f32 1.0, %v2137_v45  ;;  %v2139_v15 = vpop.eup %2138 }
 0xfe9   :  { %2140 = vrcp.f32 %v712_v46 }
 0xff3   :  { %v2141_v47 = vpop.eup %2140 }
 0xff4   :  { %v716_v49 = vsel %vm160_vm4, %v2141_v47, %v2139_v15 }
 0xff5   :  { %719 = vrot.lane.b32.xlu0 %v716_v49, %s2227_s4  ;;  %v717_v39 = vmul.f32 %v716_v49, %v649_v30  ;;  %v2506_v30 = vld [vmem:[%s2751_s6 + $0x8] sm:$0xff]  }
0x1067   :  { %v720_v19 = vpop.permute.xlu0 %719 }
0x1068   :  { %v722_v51 = vmul.f32 %v720_v19, %v716_v49 }
0x106a   :  { %724 = vrot.lane.b32.xlu1 %v722_v51, %s2227_s4 }
0x10dc   :  { %v725_v52 = vpop.permute.xlu1 %724 }
0x10dd   :  { %v727_v53 = vadd.f32 %v725_v52, %v717_v39 }
0x10df   :  { %2142 = vtanh.f32 %v727_v53 }
0x10e9   :  { %v2143_v54 = vpop.eup %2142 }
0x10ea   :  { %730 = vrot.lane.b32.xlu0 %v2143_v54, %s2227_s4 }
0x115c   :  { %v731_v55 = vpop.permute.xlu0 %730 }
0x115d   :  { %v2455_v56 = vmul.f32 %v731_v55, %v716_v49 }
0x115f   :  { %v739_v57 = vpack.c.bf16 %v2455_v56, %v2455_v56 }
0x1161   :  { %741 = vrot.lane.b32.xlu1 %v739_v57, %s2228_s29 }
0x11d3   :  { %v742_v58 = vpop.permute.xlu1 %741 }
0x11d4   :  { %1974 = vmatmul.mubr.msk.bf16.vlgmr.msra.gmra.mrb[16].mxu1 %vm274_vm5, %v742_v58 }
0x11d5   :  { %1986 = vmatpush3.bf16.msra.mxu1 %v2090_v14 }
0x12a7   :  { %v780_v59 = vpop.f32.mrb[16].mxu1 }
0x12a8   :  { %v786_v60 = vadd.f32 %v780_v59, %v2351_v33  ;;  %v1975_v62 = vpop.f32.mrb[17].mxu1 }
0x12a9   :  { %v783_v63 = vpop.f32.mrb[18].mxu1 }
0x12aa   :  { %v1794_v0 = vmul.f32 -1.442695, %v786_v60  ;;  %v1976_v1 = vpop.f32.mrb[19].mxu1 }
0x12ac   :  { %2144 = vpow2.f32 %v1794_v0 }
0x12ad   :  { %2146 = vtanh.f32 %v786_v60 }
0x12b6   :  { %v2145_v29 = vpop.eup %2144 }
0x12b7   :  { %v790_v2 = vadd.f32 1.0, %v2145_v29  ;;  %v2147_v3 = vpop.eup %2146 }
0x12b9   :  { %2148 = vrcp.f32 %v790_v2 }
0x12c3   :  { %v2149_v4 = vpop.eup %2148 }
0x12c4   :  { %v794_v5 = vsel %vm160_vm4, %v2149_v4, %v2147_v3 }
0x12c5   :  { %797 = vrot.lane.b32.xlu0 %v794_v5, %s2227_s4  ;;  %v795_v33 = vmul.f32 %v794_v5, %v727_v53 }
0x1337   :  { %v798_v7 = vpop.permute.xlu0 %797 }
0x1338   :  { %v800_v9 = vmul.f32 %v798_v7, %v794_v5 }
0x133a   :  { %802 = vrot.lane.b32.xlu1 %v800_v9, %s2227_s4 }
0x133e   :  { %345 = vrot.lane.b32.xlu1 %v2367_v61, %s2228_s29  ;;  %v2091_v61 = vld [vmem:[%s2750_s5 + $0x8] sm:$0xff]  }
0x133f   :  { %1987 = vmatprep.subr.bf16.mxu1 %v2091_v61 }
0x1340   :  { %1988 = vmatpush3.bf16.msra.mxu1 %v2091_v61 }
0x1341   :  { %2013 = vmatprep.subr.bf16.mxu1 %v2224_v8 }
0x1342   :  { %501 = vrot.lane.b32.xlu1 %v2402_v48, %s2228_s29 }
0x13ac   :  { %v803_v10 = vpop.permute.xlu1 %802 }
0x13ad   :  { %v2470_v11 = vadd.f32 %v803_v10, %v795_v33 }
0x13af   :  { %2150 = vtanh.f32 %v2470_v11 }
0x13b0   :  { %v346_v12 = vpop.permute.xlu1 %345 }
0x13b1   :  { %348 = vst.msk [vmem:[#allocation2] sm:$0xff] %vm274_vm5, %v346_v12 }
0x13b4   :  { %v502_v13 = vpop.permute.xlu1 %501 }
0x13b5   :  { %504 = vst.msk [vmem:[#allocation2 + $0x10] sm:$0xff] %vm274_vm5, %v502_v13 }
0x13b8   :  { %v895_v24 = vld [vmem:[#allocation2] sm:$0xff] }
0x13b9   :  { %v2151_v48 = vpop.eup %2150 }
0x13ba   :  { %808 = vrot.lane.b32.xlu0 %v2151_v48, %s2227_s4 }
0x13be   :  { %423 = vrot.lane.b32.xlu0 %v2384_v21, %s2228_s29 }
0x13c2   :  { %579 = vrot.lane.b32.xlu0 %v2420_v6, %s2228_s29  ;;  %v897_v6 = vld [vmem:[#allocation2 + $0x10] sm:$0xff] }
0x142c   :  { %v809_v16 = vpop.permute.xlu0 %808 }
0x142d   :  { %v2487_v17 = vmul.f32 %v809_v16, %v794_v5 }
0x142f   :  { %v817_v18 = vpack.c.bf16 %v2487_v17, %v2487_v17 }
0x1430   :  { %v424_v20 = vpop.permute.xlu0 %423 }
0x1431   :  { %426 = vst.msk [vmem:[#allocation2 + $0x8] sm:$0xff] %vm274_vm5, %v424_v20  ;;  %819 = vrot.lane.b32.xlu1 %v817_v18, %s2228_s29 }
0x1434   :  { %v580_v22 = vpop.permute.xlu0 %579 }
0x1435   :  { %582 = vst.msk [vmem:[#allocation2 + $0x18] sm:$0xff] %vm274_vm5, %v580_v22 }
0x1438   :  { %v896_v25 = vld [vmem:[#allocation2 + $0x8] sm:$0xff] }
0x1439   :  { %v903_v21 = vpack.c.bf16 %v896_v25, %v895_v24 }
0x143b   :  { %1989 = vmatprep.mubr.msk.bf16.mxu1 %vm274_vm5, %v903_v21 }
0x143c   :  { %v898_v27 = vld [vmem:[#allocation2 + $0x18] sm:$0xff] }
0x143d   :  { %v904_v35 = vpack.c.bf16 %v898_v27, %v897_v6 }
0x143f   :  { %1990 = vmatmul.mubr.msk.bf16.vlgmr.msra.gmra.mrb[20].mxu1 %vm274_vm5, %v904_v35 }
0x1440   :  { %2014 = vmatpush3.bf16.msra.mxu1 %v2498_v28 }
0x1441   :  { %2015 = vmatprep.subr.bf16.mxu1 %v2224_v8 }
0x1444   :  { %2016 = vmatpush3.bf16.msra.mxu1 %v2506_v30 }
0x1445   :  { %2029 = vmatprep.subr.bf16.mxu1 %v2224_v8 }
0x14a3   :  { %v820_v31 = vpop.permute.xlu1 %819 }
0x14a4   :  { %1982 = vmatmul.mubr.msk.bf16.vlgmr.msra.gmra.mrb[24].mxu0 %vm274_vm5, %v820_v31 }
0x14a5   :  { %1998 = vmatpush3.bf16.msra.mxu0 %v2498_v28  ;;  %2001 = vmatprep.mubr.msk.bf16.mxu0 %vm2225_vm3, %v2224_v8 }
0x14a6   :  { %1999 = vmatprep.subr.bf16.mxu0 %v2224_v8 }
0x14a9   :  { %2000 = vmatpush3.bf16.msra.mxu0 %v2506_v30 }
0x14aa   :  { %2005 = vmatprep.subr.bf16.mxu0 %v2224_v8 }
0x14ac   :  { %2002 = vmatmul.mubr.bf16.vlgmr.msra.gmra.mrb[28].mxu0 %v2226_v23 }
0x14ad   :  { %2006 = vmatpush3.bf16.msra.mxu0 %v2498_v28  ;;  %2009 = vmatprep.mubr.msk.bf16.mxu0 %vm2225_vm3, %v2224_v8 }
0x14ae   :  { %2007 = vmatprep.subr.bf16.mxu0 %v2224_v8 }
0x14b1   :  { %2008 = vmatpush3.bf16.msra.mxu0 %v2506_v30 }
0x14b2   :  { %2021 = vmatprep.subr.bf16.mxu0 %v2224_v8 }
0x1512   :  { %v2524_v32 = vpop.f32.mrb[20].mxu1 }
0x1513   :  { %v976_v36 = vpop.f32.mrb[21].mxu1 }
0x1514   :  { %v2526_v38 = vpop.f32.mrb[22].mxu1  ;;  %v977_v45 = vadd.f32 %v2534_v44, %v976_v36 }
0x1515   :  { %v2528_v40 = vpop.f32.mrb[23].mxu1 }
0x1516   :  { %v980_v18 = vadd.f32 %v2534_v44, %v2528_v40 }
0x1577   :  { %v858_v41 = vpop.f32.mrb[24].mxu0 }
0x1578   :  { %v864_v23 = vadd.f32 %v858_v41, %v2355_v37  ;;  %v1983_v42 = vpop.f32.mrb[25].mxu0 }
0x1579   :  { %v861_v43 = vpop.f32.mrb[26].mxu0 }
0x157a   :  { %v1984_v26 = vpop.f32.mrb[27].mxu0  ;;  %v1796_v58 = vmul.f32 -1.442695, %v864_v23 }
0x157f   :  { %v1057_v46 = vpop.f32.mrb[28].mxu0 }
0x1580   :  { %v1063_v15 = vadd.f32 %v1057_v46, %v977_v45  ;;  %v2003_v47 = vpop.f32.mrb[29].mxu0 }
0x1581   :  { %v1060_v49 = vpop.f32.mrb[30].mxu0 }
0x1582   :  { %v1806_v19 = vmul.f32 -1.442695, %v1063_v15  ;;  %v2004_v51 = vpop.f32.mrb[31].mxu0 }
0x1584   :  { %2152 = vpow2.f32 %v1806_v19 }
0x1585   :  { %2154 = vtanh.f32 %v1063_v15 }
0x158e   :  { %v2153_v39 = vpop.eup %2152 }
0x158f   :  { %v1067_v52 = vadd.f32 1.0, %v2153_v39  ;;  %v2155_v37 = vpop.eup %2154 }
0x1591   :  { %2156 = vrcp.f32 %v1067_v52 }
0x1592   :  { %2158 = vpow2.f32 %v1796_v58 }
0x159b   :  { %v2157_v53 = vpop.eup %2156 }
0x159c   :  { %v1071_v54 = vsel %vm160_vm4, %v2157_v53, %v2155_v37  ;;  %v2159_v59 = vpop.eup %2158 }
0x159d   :  { %1074 = vrot.lane.b32.xlu0 %v1071_v54, %s2227_s4  ;;  %v1072_v60 = vmul.f32 0.0, %v1071_v54  ;;  %v868_v62 = vadd.f32 1.0, %v2159_v59  ;;  %v985_v59 = vadd.f32 %v2524_v32, %v2534_v44 }
0x160f   :  { %v1075_v55 = vpop.permute.xlu0 %1074 }
0x1610   :  { %v1077_v57 = vmul.f32 %v1075_v55, %v1071_v54 }
0x1612   :  { %1079 = vrot.lane.b32.xlu1 %v1077_v57, %s2227_s4 }
0x1684   :  { %v1080_v63 = vpop.permute.xlu1 %1079 }
0x1685   :  { %v1082_v0 = vadd.f32 %v1080_v63, %v1072_v60 }
0x1687   :  { %2160 = vtanh.f32 %v1082_v0 }
0x1688   :  { %2162 = vrcp.f32 %v868_v62 }
0x1689   :  { %2164 = vtanh.f32 %v864_v23 }
0x1691   :  { %v2161_v1 = vpop.eup %2160 }
0x1692   :  { %v2163_v29 = vpop.eup %2162  ;;  %1085 = vrot.lane.b32.xlu0 %v2161_v1, %s2227_s4 }
0x1693   :  { %v2165_v2 = vpop.eup %2164 }
0x1694   :  { %v872_v3 = vsel %vm160_vm4, %v2163_v29, %v2165_v2 }
0x1695   :  { %v873_v12 = vmul.f32 %v872_v3, %v2470_v11 }
0x1696   :  { %875 = vrot.lane.b32.xlu0 %v872_v3, %s2227_s4 }
0x1704   :  { %v1086_v4 = vpop.permute.xlu0 %1085 }
0x1705   :  { %v2545_v5 = vmul.f32 %v1086_v4, %v1071_v54 }
0x1707   :  { %v1094_v7 = vpack.c.bf16 %v2545_v5, %v2545_v5 }
0x1708   :  { %v876_v9 = vpop.permute.xlu0 %875 }
0x1709   :  { %v878_v33 = vmul.f32 %v876_v9, %v872_v3  ;;  %1096 = vrot.lane.b32.xlu1 %v1094_v7, %s2228_s29 }
0x170b   :  { %880 = vrot.lane.b32.xlu0 %v878_v33, %s2227_s4 }
0x177b   :  { %v1097_v10 = vpop.permute.xlu1 %1096 }
0x177c   :  { %2010 = vmatmul.mubr.msk.bf16.vlgmr.msra.gmra.mrb[32].mxu0 %vm274_vm5, %v1097_v10 }
0x177d   :  { %v881_v13 = vpop.permute.xlu0 %880  ;;  %2022 = vmatpush3.bf16.msra.mxu0 %v2498_v28  ;;  %2025 = vmatprep.mubr.msk.bf16.mxu0 %vm2225_vm3, %v2224_v8 }
0x177e   :  { %v883_v14 = vadd.f32 %v881_v13, %v873_v12  ;;  %2023 = vmatprep.subr.bf16.mxu0 %v2224_v8 }
0x1780   :  { %2166 = vtanh.f32 %v883_v14 }
0x1781   :  { %2024 = vmatpush3.bf16.msra.mxu0 %v2506_v30 }
0x1782   :  { %2037 = vmatprep.subr.bf16.mxu0 %v2224_v8 }
0x178a   :  { %v2167_v61 = vpop.eup %2166 }
0x178b   :  { %886 = vrot.lane.b32.xlu0 %v2167_v61, %s2227_s4 }
0x178f   :  { %657 = vrot.lane.b32.xlu0 %v2437_v34, %s2228_s29 }
0x1793   :  { %813 = vrot.lane.b32.xlu0 %v2487_v17, %s2228_s29 }
0x17fd   :  { %v887_v11 = vpop.permute.xlu0 %886 }
0x17fe   :  { %v889_v26 = vmul.f32 %v887_v11, %v872_v3 }
0x1801   :  { %v658_v48 = vpop.permute.xlu0 %657 }
0x1802   :  { %660 = vst.msk [vmem:[#allocation2 + $0x20] sm:$0xff] %vm274_vm5, %v658_v48 }
0x1805   :  { %v814_v16 = vpop.permute.xlu0 %813 }
0x1806   :  { %816 = vst.msk [vmem:[#allocation2 + $0x30] sm:$0xff] %vm274_vm5, %v814_v16 }
0x1809   :  { %v899_v19 = vld [vmem:[#allocation2 + $0x20] sm:$0xff] }
0x180d   :  { %v901_v39 = vld [vmem:[#allocation2 + $0x30] sm:$0xff] }
0x184f   :  { %v1135_v20 = vpop.f32.mrb[32].mxu0 }
0x1850   :  { %v1141_v22 = vadd.f32 %v1135_v20, %v980_v18  ;;  %v2011_v24 = vpop.f32.mrb[33].mxu0  ;;  %v988_v18 = vadd.f32 %v2526_v38, %v2534_v44 }
0x1851   :  { %v1138_v25 = vpop.f32.mrb[34].mxu0 }
0x1852   :  { %v1808_v21 = vmul.f32 -1.442695, %v1141_v22  ;;  %v2012_v6 = vpop.f32.mrb[35].mxu0 }
0x1854   :  { %2168 = vpow2.f32 %v1808_v21 }
0x1855   :  { %2170 = vtanh.f32 %v1141_v22 }
0x185e   :  { %v2169_v34 = vpop.eup %2168 }
0x185f   :  { %v1145_v27 = vadd.f32 1.0, %v2169_v34  ;;  %v2171_v17 = vpop.eup %2170 }
0x1861   :  { %2172 = vrcp.f32 %v1145_v27 }
0x186b   :  { %v2173_v35 = vpop.eup %2172 }
0x186c   :  { %v1149_v31 = vsel %vm160_vm4, %v2173_v35, %v2171_v17 }
0x186d   :  { %1152 = vrot.lane.b32.xlu1 %v1149_v31, %s2227_s4  ;;  %v1150_v41 = vmul.f32 %v1149_v31, %v1082_v0 }
0x18df   :  { %v1153_v36 = vpop.permute.xlu1 %1152 }
0x18e0   :  { %v1155_v40 = vmul.f32 %v1153_v36, %v1149_v31 }
0x18e2   :  { %1157 = vrot.lane.b32.xlu1 %v1155_v40, %s2227_s4 }
0x1954   :  { %v1158_v23 = vpop.permute.xlu1 %1157 }
0x1955   :  { %v1160_v42 = vadd.f32 %v1158_v23, %v1150_v41 }
0x1957   :  { %2174 = vtanh.f32 %v1160_v42 }
0x1961   :  { %v2175_v43 = vpop.eup %2174 }
0x1962   :  { %1163 = vrot.lane.b32.xlu1 %v2175_v43, %s2227_s4 }
0x1966   :  { %735 = vrot.lane.b32.xlu1 %v2455_v56, %s2228_s29 }
0x196a   :  { %891 = vrot.lane.b32.xlu1 %v889_v26, %s2228_s29 }
0x19d4   :  { %v1164_v45 = vpop.permute.xlu1 %1163 }
0x19d5   :  { %v2576_v46 = vmul.f32 %v1164_v45, %v1149_v31 }
0x19d7   :  { %v1172_v15 = vpack.c.bf16 %v2576_v46, %v2576_v46 }
0x19d8   :  { %v736_v47 = vpop.permute.xlu1 %735 }
0x19d9   :  { %738 = vst.msk [vmem:[#allocation2 + $0x28] sm:$0xff] %vm274_vm5, %v736_v47  ;;  %1174 = vrot.lane.b32.xlu0 %v1172_v15, %s2228_s29 }
0x19dc   :  { %v892_v49 = vpop.permute.xlu1 %891 }
0x19dd   :  { %894 = vst.msk [vmem:[#allocation2 + $0x38] sm:$0xff] %vm274_vm5, %v892_v49 }
0x19e0   :  { %v900_v51 = vld [vmem:[#allocation2 + $0x28] sm:$0xff] }
0x19e1   :  { %v905_v56 = vpack.c.bf16 %v900_v51, %v899_v19 }
0x19e3   :  { %1993 = vmatprep.mubr.msk.bf16.mxu1 %vm274_vm5, %v905_v56 }
0x19e4   :  { %v902_v52 = vld [vmem:[#allocation2 + $0x38] sm:$0xff] }
0x19e5   :  { %v906_v37 = vpack.c.bf16 %v902_v52, %v901_v39 }
0x19e7   :  { %1994 = vmatmul.mubr.msk.bf16.gmra.mrb[24].mxu1 %vm274_vm5, %v906_v37 }
0x19e8   :  { %2017 = vmatprep.mubr.msk.bf16.mxu1 %vm2225_vm3, %v2224_v8 }
0x1a4b   :  { %v1175_v53 = vpop.permute.xlu0 %1174 }
0x1a4c   :  { %2018 = vmatmul.mubr.msk.bf16.vlgmr.msra.gmra.mrb[28].mxu1 %vm274_vm5, %v1175_v53 }
0x1a4d   :  { %2030 = vmatpush3.bf16.msra.mxu1 %v2498_v28  ;;  %2033 = vmatprep.mubr.msk.bf16.mxu1 %vm2225_vm3, %v2224_v8 }
0x1a4e   :  { %2031 = vmatprep.subr.bf16.mxu1 %v2224_v8 }
0x1a51   :  { %2032 = vmatpush3.bf16.msra.mxu1 %v2506_v30 }
0x1a52   :  { %2045 = vmatprep.subr.bf16.mxu1 %v2224_v8 }
0x1aba   :  { %v2594_v54 = vpop.f32.mrb[24].mxu1 }
0x1abb   :  { %v2596_v55 = vpop.f32.mrb[25].mxu1 }
0x1abc   :  { %v2598_v57 = vpop.f32.mrb[26].mxu1  ;;  %v993_v47 = vadd.f32 %v2534_v44, %v2596_v55 }
0x1abd   :  { %v2600_v58 = vpop.f32.mrb[27].mxu1 }
0x1b1f   :  { %v1213_v60 = vpop.f32.mrb[28].mxu1 }
0x1b20   :  { %v1219_v62 = vadd.f32 %v1213_v60, %v985_v59  ;;  %v2019_v63 = vpop.f32.mrb[29].mxu1 }
0x1b21   :  { %v1216_v0 = vpop.f32.mrb[30].mxu1 }
0x1b22   :  { %v1810_v1 = vmul.f32 -1.442695, %v1219_v62  ;;  %v2020_v29 = vpop.f32.mrb[31].mxu1 }
0x1b24   :  { %2176 = vpow2.f32 %v1810_v1 }
0x1b25   :  { %2178 = vtanh.f32 %v1219_v62 }
0x1b2e   :  { %v2177_v2 = vpop.eup %2176 }
0x1b2f   :  { %v1223_v3 = vadd.f32 1.0, %v2177_v2  ;;  %v2179_v4 = vpop.eup %2178 }
0x1b31   :  { %2180 = vrcp.f32 %v1223_v3 }
0x1b3b   :  { %v2181_v7 = vpop.eup %2180 }
0x1b3c   :  { %v1227_v9 = vsel %vm160_vm4, %v2181_v7, %v2179_v4 }
0x1b3d   :  { %1230 = vrot.lane.b32.xlu1 %v1227_v9, %s2227_s4  ;;  %v1228_v10 = vmul.f32 %v1227_v9, %v1160_v42 }
0x1baf   :  { %v1231_v33 = vpop.permute.xlu1 %1230 }
0x1bb0   :  { %v1233_v32 = vmul.f32 %v1231_v33, %v1227_v9  ;;  %v996_v33 = vadd.f32 %v2534_v44, %v2600_v58 }
0x1bb2   :  { %1235 = vrot.lane.b32.xlu0 %v1233_v32, %s2227_s4 }
0x1c24   :  { %v1236_v12 = vpop.permute.xlu0 %1235 }
0x1c25   :  { %v1238_v13 = vadd.f32 %v1236_v12, %v1228_v10 }
0x1c27   :  { %2182 = vtanh.f32 %v1238_v13 }
0x1c31   :  { %v2183_v14 = vpop.eup %2182 }
0x1c32   :  { %1241 = vrot.lane.b32.xlu1 %v2183_v14, %s2227_s4 }
0x1ca4   :  { %v1242_v61 = vpop.permute.xlu1 %1241 }
0x1ca5   :  { %v2609_v11 = vmul.f32 %v1242_v61, %v1227_v9 }
0x1ca7   :  { %v1250_v48 = vpack.c.bf16 %v2609_v11, %v2609_v11 }
0x1ca9   :  { %1252 = vrot.lane.b32.xlu0 %v1250_v48, %s2228_s29 }
0x1d1b   :  { %v1253_v16 = vpop.permute.xlu0 %1252 }
0x1d1c   :  { %2026 = vmatmul.mubr.msk.bf16.vlgmr.msra.gmra.mrb[36].mxu0 %vm274_vm5, %v1253_v16 }
0x1d1d   :  { %2038 = vmatpush3.bf16.msra.mxu0 %v2498_v28  ;;  %2041 = vmatprep.mubr.msk.bf16.mxu0 %vm2225_vm3, %v2224_v8 }
0x1d1e   :  { %2039 = vmatprep.subr.bf16.mxu0 %v2224_v8 }
0x1d21   :  { %2040 = vmatpush3.bf16.msra.mxu0 %v2506_v30 }
0x1d22   :  { %2053 = vmatprep.subr.bf16.mxu0 %v2224_v8 }
0x1def   :  { %v1291_v20 = vpop.f32.mrb[36].mxu0 }
0x1df0   :  { %v1297_v22 = vadd.f32 %v1291_v20, %v988_v18  ;;  %v2027_v24 = vpop.f32.mrb[37].mxu0 }
0x1df1   :  { %v1294_v25 = vpop.f32.mrb[38].mxu0 }
0x1df2   :  { %v1812_v21 = vmul.f32 -1.442695, %v1297_v22  ;;  %v2028_v6 = vpop.f32.mrb[39].mxu0 }
0x1df4   :  { %2184 = vpow2.f32 %v1812_v21 }
0x1df5   :  { %2186 = vtanh.f32 %v1297_v22 }
0x1dfe   :  { %v2185_v34 = vpop.eup %2184 }
0x1dff   :  { %v1301_v27 = vadd.f32 1.0, %v2185_v34  ;;  %v2187_v17 = vpop.eup %2186 }
0x1e01   :  { %2188 = vrcp.f32 %v1301_v27 }
0x1e0b   :  { %v2189_v35 = vpop.eup %2188 }
0x1e0c   :  { %v1305_v31 = vsel %vm160_vm4, %v2189_v35, %v2187_v17  ;;  %v1001_v17 = vadd.f32 %v2594_v54, %v2534_v44 }
0x1e0d   :  { %1308 = vrot.lane.b32.xlu1 %v1305_v31, %s2227_s4  ;;  %v1306_v40 = vmul.f32 %v1305_v31, %v1238_v13 }
0x1e7f   :  { %v1309_v36 = vpop.permute.xlu1 %1308 }
0x1e80   :  { %v1311_v38 = vmul.f32 %v1309_v36, %v1305_v31 }
0x1e82   :  { %1313 = vrot.lane.b32.xlu0 %v1311_v38, %s2227_s4 }
0x1ef4   :  { %v1314_v41 = vpop.permute.xlu0 %1313 }
0x1ef5   :  { %v1316_v23 = vadd.f32 %v1314_v41, %v1306_v40 }
0x1ef7   :  { %2190 = vtanh.f32 %v1316_v23 }
0x1f01   :  { %v2191_v42 = vpop.eup %2190 }
0x1f02   :  { %1319 = vrot.lane.b32.xlu1 %v2191_v42, %s2227_s4 }
0x1f74   :  { %v1320_v43 = vpop.permute.xlu1 %1319 }
0x1f75   :  { %v2628_v26 = vmul.f32 %v1320_v43, %v1305_v31 }
0x1f77   :  { %v1328_v45 = vpack.c.bf16 %v2628_v26, %v2628_v26 }
0x1f79   :  { %1330 = vrot.lane.b32.xlu0 %v1328_v45, %s2228_s29 }
0x1feb   :  { %v1331_v15 = vpop.permute.xlu0 %1330 }
0x1fec   :  { %2034 = vmatmul.mubr.msk.bf16.vlgmr.msra.gmra.mrb[32].mxu1 %vm274_vm5, %v1331_v15 }
0x1fed   :  { %2046 = vmatpush3.bf16.msra.mxu1 %v2498_v28  ;;  %2049 = vmatprep.mubr.msk.bf16.mxu1 %vm2225_vm3, %v2224_v8 }
0x1fee   :  { %2047 = vmatprep.subr.bf16.mxu1 %v2224_v8 }
0x1ff1   :  { %2048 = vmatpush3.bf16.msra.mxu1 %v2506_v30 }
0x20bf   :  { %v1369_v49 = vpop.f32.mrb[32].mxu1 }
0x20c0   :  { %v1375_v19 = vadd.f32 %v1369_v49, %v993_v47  ;;  %v2035_v51 = vpop.f32.mrb[33].mxu1 }
0x20c1   :  { %v1372_v56 = vpop.f32.mrb[34].mxu1 }
0x20c2   :  { %v1814_v39 = vmul.f32 -1.442695, %v1375_v19  ;;  %v2036_v52 = vpop.f32.mrb[35].mxu1 }
0x20c4   :  { %2192 = vpow2.f32 %v1814_v39 }
0x20c5   :  { %2194 = vtanh.f32 %v1375_v19 }
0x20ce   :  { %v2193_v37 = vpop.eup %2192 }
0x20cf   :  { %v1379_v53 = vadd.f32 1.0, %v2193_v37  ;;  %v2195_v59 = vpop.eup %2194 }
0x20d1   :  { %2196 = vrcp.f32 %v1379_v53 }
0x20db   :  { %v2197_v60 = vpop.eup %2196 }
0x20dc   :  { %v1383_v62 = vsel %vm160_vm4, %v2197_v60, %v2195_v59  ;;  %v1004_v59 = vadd.f32 %v2598_v57, %v2534_v44 }
0x20dd   :  { %1386 = vrot.lane.b32.xlu1 %v1383_v62, %s2227_s4  ;;  %v1384_v0 = vmul.f32 %v1383_v62, %v1316_v23 }
0x214f   :  { %v1387_v63 = vpop.permute.xlu1 %1386 }
0x2150   :  { %v1389_v55 = vmul.f32 %v1387_v63, %v1383_v62 }
0x2152   :  { %1391 = vrot.lane.b32.xlu0 %v1389_v55, %s2227_s4 }
0x21c4   :  { %v1392_v1 = vpop.permute.xlu0 %1391 }
0x21c5   :  { %v1394_v29 = vadd.f32 %v1392_v1, %v1384_v0 }
0x21c7   :  { %2198 = vtanh.f32 %v1394_v29 }
0x21d1   :  { %v2199_v2 = vpop.eup %2198 }
0x21d2   :  { %1397 = vrot.lane.b32.xlu1 %v2199_v2, %s2227_s4 }
0x2244   :  { %v1398_v3 = vpop.permute.xlu1 %1397 }
0x2245   :  { %v2646_v4 = vmul.f32 %v1398_v3, %v1383_v62 }
0x2247   :  { %v1406_v7 = vpack.c.bf16 %v2646_v4, %v2646_v4 }
0x2249   :  { %1408 = vrot.lane.b32.xlu0 %v1406_v7, %s2228_s29 }
0x22bb   :  { %v1409_v9 = vpop.permute.xlu0 %1408 }
0x22bc   :  { %2042 = vmatmul.mubr.msk.bf16.vlgmr.msra.gmra.mrb[40].mxu0 %vm274_vm5, %v1409_v9 }
0x22bd   :  { %2054 = vmatpush3.bf16.msra.mxu0 %v2498_v28  ;;  %2057 = vmatprep.mubr.msk.bf16.mxu0 %vm2225_vm3, %v2224_v8 }
0x22be   :  { %2055 = vmatprep.subr.bf16.mxu0 %v2224_v8 }
0x22c1   :  { %2056 = vmatpush3.bf16.msra.mxu0 %v2506_v30 }
0x238f   :  { %v1447_v32 = vpop.f32.mrb[40].mxu0 }
0x2390   :  { %v1453_v10 = vadd.f32 %v1447_v32, %v996_v33  ;;  %v2043_v12 = vpop.f32.mrb[41].mxu0 }
0x2391   :  { %v1450_v13 = vpop.f32.mrb[42].mxu0 }
0x2392   :  { %v1816_v14 = vmul.f32 -1.442695, %v1453_v10  ;;  %v2044_v61 = vpop.f32.mrb[43].mxu0  ;;  %v2095_v13 = vld [vmem:[%s2753_s8 + $0x8] sm:$0xff]  }
0x2394   :  { %2200 = vpow2.f32 %v1816_v14 }
0x2395   :  { %2202 = vtanh.f32 %v1453_v10 }
0x239e   :  { %v2201_v48 = vpop.eup %2200 }
0x239f   :  { %v1457_v16 = vadd.f32 1.0, %v2201_v48  ;;  %v2203_v28 = vpop.eup %2202 }
0x23a1   :  { %2204 = vrcp.f32 %v1457_v16 }
0x23ab   :  { %v2205_v18 = vpop.eup %2204 }
0x23ac   :  { %v1461_v8 = vsel %vm160_vm4, %v2205_v18, %v2203_v28 }
0x23ad   :  { %1464 = vrot.lane.b32.xlu1 %v1461_v8, %s2227_s4  ;;  %v1462_v20 = vmul.f32 %v1461_v8, %v1394_v29 }
0x241f   :  { %v1465_v30 = vpop.permute.xlu1 %1464 }
0x2420   :  { %v1467_v58 = vmul.f32 %v1465_v30, %v1461_v8 }
0x2422   :  { %1469 = vrot.lane.b32.xlu0 %v1467_v58, %s2227_s4 }
0x2494   :  { %v1470_v22 = vpop.permute.xlu0 %1469 }
0x2495   :  { %v1472_v24 = vadd.f32 %v1470_v22, %v1462_v20 }
0x2497   :  { %2206 = vtanh.f32 %v1472_v24 }
0x24a1   :  { %v2207_v25 = vpop.eup %2206 }
0x24a2   :  { %1475 = vrot.lane.b32.xlu1 %v2207_v25, %s2227_s4 }
0x2514   :  { %v1476_v21 = vpop.permute.xlu1 %1475 }
0x2515   :  { %v2664_v6 = vmul.f32 %v1476_v21, %v1461_v8 }
0x2517   :  { %v1484_v34 = vpack.c.bf16 %v2664_v6, %v2664_v6 }
0x2519   :  { %1486 = vrot.lane.b32.xlu0 %v1484_v34, %s2228_s29 }
0x258b   :  { %v1487_v27 = vpop.permute.xlu0 %1486 }
0x258c   :  { %2050 = vmatmul.mubr.msk.bf16.vlgmr.msra.gmra.mrb[36].mxu1 %vm274_vm5, %v1487_v27 }
0x265f   :  { %v1525_v35 = vpop.f32.mrb[36].mxu1 }
0x2660   :  { %v1531_v31 = vadd.f32 %v1525_v35, %v1001_v17  ;;  %v2051_v36 = vpop.f32.mrb[37].mxu1  ;;  %v1821_v17 = vld [vmem:[%s2754_s9] ss:$0 sm:$0xff] }
0x2661   :  { %v1528_v38 = vpop.f32.mrb[38].mxu1 }
0x2662   :  { %v1818_v40 = vmul.f32 -1.442695, %v1531_v31  ;;  %v2052_v41 = vpop.f32.mrb[39].mxu1 }
0x2664   :  { %2208 = vpow2.f32 %v1818_v40 }
0x2665   :  { %2210 = vtanh.f32 %v1531_v31 }
0x266e   :  { %v2209_v23 = vpop.eup %2208 }
0x266f   :  { %v1535_v42 = vadd.f32 1.0, %v2209_v23  ;;  %v2211_v43 = vpop.eup %2210 }
0x2671   :  { %2212 = vrcp.f32 %v1535_v42 }
0x267b   :  { %v2213_v45 = vpop.eup %2212 }
0x267c   :  { %v1539_v15 = vsel %vm160_vm4, %v2213_v45, %v2211_v43 }
0x267d   :  { %1542 = vrot.lane.b32.xlu1 %v1539_v15, %s2227_s4  ;;  %v1540_v49 = vmul.f32 %v1539_v15, %v1472_v24 }
0x26ef   :  { %v1543_v47 = vpop.permute.xlu1 %1542 }
0x26f0   :  { %v1545_v54 = vmul.f32 %v1543_v47, %v1539_v15 }
0x26f2   :  { %1547 = vrot.lane.b32.xlu0 %v1545_v54, %s2227_s4 }
0x2764   :  { %v1548_v19 = vpop.permute.xlu0 %1547 }
0x2765   :  { %v1550_v51 = vadd.f32 %v1548_v19, %v1540_v49 }
0x2767   :  { %2214 = vtanh.f32 %v1550_v51 }
0x2771   :  { %v2215_v56 = vpop.eup %2214 }
0x2772   :  { %1553 = vrot.lane.b32.xlu1 %v2215_v56, %s2227_s4 }
0x27e4   :  { %v1554_v39 = vpop.permute.xlu1 %1553 }
0x27e5   :  { %v1556_v52 = vmul.f32 %v1554_v39, %v1539_v15 }
0x27e7   :  { %v1562_v37 = vpack.c.bf16 %v1556_v52, %v1556_v52 }
0x27e9   :  { %1564 = vrot.lane.b32.xlu0 %v1562_v37, %s2228_s29 }
0x285b   :  { %v1565_v53 = vpop.permute.xlu0 %1564 }
0x285c   :  { %2058 = vmatmul.mubr.msk.bf16.vlgmr.msra.gmra.mrb[44].mxu0 %vm274_vm5, %v1565_v53 }
0x292f   :  { %v1603_v60 = vpop.f32.mrb[44].mxu0 }
0x2930   :  { %v1609_v62 = vadd.f32 %v1603_v60, %v1004_v59  ;;  %v2059_v63 = vpop.f32.mrb[45].mxu0 }
0x2931   :  { %v1606_v55 = vpop.f32.mrb[46].mxu0 }
0x2932   :  { %v1820_v0 = vmul.f32 -1.442695, %v1609_v62  ;;  %v2060_v1 = vpop.f32.mrb[47].mxu0 }
0x2934   :  { %2216 = vpow2.f32 %v1820_v0 }
0x2935   :  { %2218 = vtanh.f32 %v1609_v62 }
0x293e   :  { %v2217_v29 = vpop.eup %2216 }
0x293f   :  { %v1613_v2 = vadd.f32 1.0, %v2217_v29  ;;  %v2219_v3 = vpop.eup %2218 }
0x2941   :  { %2220 = vrcp.f32 %v1613_v2 }
0x294b   :  { %v2221_v7 = vpop.eup %2220 }
0x294c   :  { %v1617_v9 = vsel %vm160_vm4, %v2221_v7, %v2219_v3 }
0x294d   :  { %1620 = vrot.lane.b32.xlu1 %v1617_v9, %s2227_s4  ;;  %v1618_v57 = vmul.f32 %v1617_v9, %v1550_v51 }
0x29bf   :  { %v1621_v33 = vpop.permute.xlu1 %1620 }
0x29c0   :  { %v1623_v44 = vmul.f32 %v1621_v33, %v1617_v9 }
0x29c2   :  { %1625 = vrot.lane.b32.xlu0 %v1623_v44, %s2227_s4 }
0x29c6   :  { %1090 = vrot.lane.b32.xlu0 %v2545_v5, %s2228_s29  ;;  %v2094_v5 = vld [vmem:[%s2753_s8] sm:$0xff]  }
0x29c7   :  { %2061 = vmatprep.subr.bf16.mxu1 %v2094_v5 }
0x29c8   :  { %2062 = vmatpush3.bf16.msra.mxu1 %v2094_v5 }
0x29c9   :  { %2063 = vmatprep.subr.bf16.mxu1 %v2095_v13 }
0x29ca   :  { %1246 = vrot.lane.b32.xlu0 %v2609_v11, %s2228_s29 }
0x29cc   :  { %2064 = vmatpush3.bf16.msra.mxu1 %v2095_v13 }
0x29ce   :  { %1402 = vrot.lane.b32.xlu0 %v2646_v4, %s2228_s29 }
0x29d2   :  { %1558 = vrot.lane.b32.xlu0 %v1556_v52, %s2228_s29 }
0x2a34   :  { %v1626_v50 = vpop.permute.xlu0 %1625 }
0x2a35   :  { %v1628_v32 = vadd.f32 %v1626_v50, %v1618_v57 }
0x2a37   :  { %2222 = vtanh.f32 %v1628_v32 }
0x2a38   :  { %v1091_v10 = vpop.permute.xlu0 %1090 }
0x2a39   :  { %1093 = vst.msk [vmem:[#allocation2] sm:$0xff] %vm274_vm5, %v1091_v10 }
0x2a3c   :  { %v1247_v12 = vpop.permute.xlu0 %1246 }
0x2a3d   :  { %1249 = vst.msk [vmem:[#allocation2 + $0x10] sm:$0xff] %vm274_vm5, %v1247_v12 }
0x2a40   :  { %v1403_v11 = vpop.permute.xlu0 %1402  ;;  %v1640_v8 = vld [vmem:[#allocation2] sm:$0xff] }
0x2a41   :  { %v2223_v4 = vpop.eup %2222  ;;  %1405 = vst.msk [vmem:[#allocation2 + $0x20] sm:$0xff] %vm274_vm5, %v1403_v11 }
0x2a42   :  { %1631 = vrot.lane.b32.xlu1 %v2223_v4, %s2227_s4 }
0x2a44   :  { %v1559_v14 = vpop.permute.xlu0 %1558 }
0x2a45   :  { %1561 = vst.msk [vmem:[#allocation2 + $0x30] sm:$0xff] %vm274_vm5, %v1559_v14 }
0x2a46   :  { %1168 = vrot.lane.b32.xlu1 %v2576_v46, %s2228_s29 }
0x2a48   :  { %v1644_v22 = vld [vmem:[#allocation2 + $0x20] sm:$0xff] }
0x2a4a   :  { %1324 = vrot.lane.b32.xlu1 %v2628_v26, %s2228_s29  ;;  %v1642_v26 = vld [vmem:[#allocation2 + $0x10] sm:$0xff] }
0x2a4e   :  { %1480 = vrot.lane.b32.xlu1 %v2664_v6, %s2228_s29  ;;  %v1646_v6 = vld [vmem:[#allocation2 + $0x30] sm:$0xff] }
0x2ab4   :  { %v1632_v61 = vpop.permute.xlu1 %1631 }
0x2ab5   :  { %v1634_v48 = vmul.f32 %v1632_v61, %v1617_v9 }
0x2ab7   :  { %1636 = vrot.lane.b32.xlu1 %v1634_v48, %s2228_s29 }
0x2ab8   :  { %v1169_v16 = vpop.permute.xlu1 %1168 }
0x2ab9   :  { %1171 = vst.msk [vmem:[#allocation2 + $0x8] sm:$0xff] %vm274_vm5, %v1169_v16 }
0x2abc   :  { %v1325_v28 = vpop.permute.xlu1 %1324 }
0x2abd   :  { %1327 = vst.msk [vmem:[#allocation2 + $0x18] sm:$0xff] %vm274_vm5, %v1325_v28 }
0x2ac0   :  { %v1481_v18 = vpop.permute.xlu1 %1480  ;;  %v1641_v30 = vld [vmem:[#allocation2 + $0x8] sm:$0xff] }
0x2ac1   :  { %1483 = vst.msk [vmem:[#allocation2 + $0x28] sm:$0xff] %vm274_vm5, %v1481_v18  ;;  %v1648_v46 = vpack.c.bf16 %v1641_v30, %v1640_v8 }
0x2ac3   :  { %2065 = vmatprep.mubr.msk.bf16.mxu1 %vm274_vm5, %v1648_v46 }
0x2ac4   :  { %v1643_v58 = vld [vmem:[#allocation2 + $0x18] sm:$0xff] }
0x2ac5   :  { %v1649_v20 = vpack.c.bf16 %v1643_v58, %v1642_v26 }
0x2ac7   :  { %2066 = vmatmul.mubr.msk.bf16.vlgmr.msra.gmra.mrb[40].mxu1 %vm274_vm5, %v1649_v20 }
0x2ac8   :  { %v1645_v24 = vld [vmem:[#allocation2 + $0x28] sm:$0xff] }
0x2ac9   :  { %v1650_v25 = vpack.c.bf16 %v1645_v24, %v1644_v22 }
0x2acb   :  { %2069 = vmatprep.mubr.msk.bf16.mxu1 %vm274_vm5, %v1650_v25 }
0x2b29   :  { %v1637_v21 = vpop.permute.xlu1 %1636 }
0x2b2a   :  { %1639 = vst.msk [vmem:[#allocation2 + $0x38] sm:$0xff] %vm274_vm5, %v1637_v21 }
0x2b31   :  { %v1647_v34 = vld [vmem:[#allocation2 + $0x38] sm:$0xff] }
0x2b32   :  { %v1651_v27 = vpack.c.bf16 %v1647_v34, %v1646_v6 }
0x2b34   :  { %2070 = vmatmul.mubr.msk.bf16.gmra.mrb[44].mxu1 %vm274_vm5, %v1651_v27 }
0x2b9a   :  { %v2067_v35 = vpop.f32.mrb[40].mxu1 }
0x2b9b   :  { %v1730_v31 = vadd.f32 %v2067_v35, %v1821_v17  ;;  %v1721_v36 = vpop.f32.mrb[41].mxu1 }
0x2b9c   :  { %v1722_v38 = vadd.f32 %v1821_v17, %v1721_v36  ;;  %v2068_v40 = vpop.f32.mrb[42].mxu1 }
0x2b9d   :  { %1754 = vst [vmem:[%s2755_s10 + $0x10] sm:$0xff] %v1730_v31  ;;  %v1733_v41 = vadd.f32 %v2068_v40, %v1821_v17  ;;  %v1724_v23 = vpop.f32.mrb[43].mxu1 }
0x2b9e   :  { %1752 = vst [vmem:[%s2755_s10] sm:$0xff] %v1722_v38  ;;  %v1725_v42 = vadd.f32 %v1821_v17, %v1724_v23 }
0x2b9f   :  { %1755 = vst [vmem:[%s2755_s10 + $0x18] sm:$0xff] %v1733_v41 }
0x2ba0   :  { %1753 = vst [vmem:[%s2755_s10 + $0x8] sm:$0xff] %v1725_v42 }
0x2c07   :  { %v2071_v43 = vpop.f32.mrb[44].mxu1 }
0x2c08   :  { %v1746_v45 = vadd.f32 %v2071_v43, %v1821_v17  ;;  %v1737_v15 = vpop.f32.mrb[45].mxu1 }
0x2c09   :  { %v1738_v47 = vadd.f32 %v1821_v17, %v1737_v15  ;;  %v2072_v54 = vpop.f32.mrb[46].mxu1 }
0x2c0a   :  { %1758 = vst [vmem:[%s2755_s10 + $0x30] sm:$0xff] %v1746_v45  ;;  %v1749_v49 = vadd.f32 %v2072_v54, %v1821_v17  ;;  %v1740_v19 = vpop.f32.mrb[47].mxu1 }
0x2c0b   :  { %1756 = vst [vmem:[%s2755_s10 + $0x20] sm:$0xff] %v1738_v47  ;;  %v1741_v51 = vadd.f32 %v1821_v17, %v1740_v19 }
0x2c0c   :  { %1759 = vst [vmem:[%s2755_s10 + $0x38] sm:$0xff] %v1749_v49 }
0x2c0d   :  { %1757 = vst [vmem:[%s2755_s10 + $0x28] sm:$0xff] %v1741_v51 }

</bundles_post_ra>
